<compile_context>
chip_gen: v7x
topology: tpu7x:2x2x1
jax: 0.10.0
libtpu: 0.0.40
codegen_flags: <defaults>
</compile_context>

<pallas_src>
import jax
import jax.numpy as jnp
from jax.experimental import pallas as pl
from jax.experimental.pallas import tpu as pltpu  # noqa: F401  (kept for TPU-specific knobs)

# ----------------------------- sizes -----------------------------------------
B = 4          # batch
K = 3          # n_objects in context (ShapeGlot triplet)
T = 8          # padded sequence length
VOCAB = 32     # vocabulary size
E = 16         # word embedding dim
H = 32         # LSTM hidden dim == pc embedding dim
F_PC = 64      # pretrained point-cloud feature dim
N_ITEMS = 20   # number of shapes in the pretrained feature table
D1 = 64        # MLP hidden dim
KB = K * B     # stacked (object, batch) rows


# ----------------------------- Pallas kernel ---------------------------------
def t2s_listener_kernel(emb_ref, mask_ref, pc_ref,
                        wpc_ref, bpc_ref,
                        wih_ref, whh_ref, blstm_ref,
                        w1_ref, b1_ref, w2_ref, b2_ref,
                        out_ref):
    """Single invocation: all K objects stacked into the row dimension.

    emb_ref  : [T*KB, E]    time-major token embeddings, tiled across objects
    mask_ref : [T, KB, H]   1.0 at the last non-pad timestep (pre-broadcast over H)
    pc_ref   : [KB, F_PC]   pretrained pc features, rows ordered k*B + b
    out_ref  : [KB, 1]      logits, rows ordered k*B + b
    """
    # --- pc encoder: linear projection of pretrained features -> [KB, H] -----
    pc = jnp.dot(pc_ref[...], wpc_ref[...],
                 preferred_element_type=jnp.float32) + bpc_ref[...]

    # --- hoisted LSTM input projection (no recurrent dependency) -------------
    #     xp[t*KB + r] = emb[t, r] @ w_ih + b  for all timesteps at once.
    xp = jnp.dot(emb_ref[...], wih_ref[...],
                 preferred_element_type=jnp.float32) + blstm_ref[...]   # [T*KB, 4H]
    w_hh = whh_ref[...]

    # --- LSTM recurrence, state carried in vreg locals ------------------------
    h = pc
    c = pc
    h_last = jnp.zeros_like(pc)

    for t in range(T):                                   # static trip count, unrolled
        gates = xp[t * KB:(t + 1) * KB] + jnp.dot(
            h, w_hh, preferred_element_type=jnp.float32)            # [KB, 4H]
        sg = jax.nn.sigmoid(gates)                        # one EUP push over full block
        tg = jnp.tanh(gates)                              # one EUP push over full block
        i_g = sg[:, 0 * H:1 * H]
        f_g = sg[:, 1 * H:2 * H]
        o_g = sg[:, 3 * H:4 * H]
        g_g = tg[:, 2 * H:3 * H]
        c = f_g * c + i_g * g_g
        h = o_g * jnp.tanh(c)
        # hidden state at the last valid timestep (off the recurrent chain)
        h_last = h_last + mask_ref[t] * h

    # --- logit MLP on concat([lang, pc], axis=1), expressed as split matmuls --
    hid = (jnp.dot(h_last, w1_ref[0:H, :], preferred_element_type=jnp.float32)
           + jnp.dot(pc, w1_ref[H:2 * H, :], preferred_element_type=jnp.float32)
           + b1_ref[...])
    hid = jnp.maximum(hid, 0.0)                           # ReLU
    logit = jnp.dot(hid, w2_ref[...],
                    preferred_element_type=jnp.float32) + b2_ref[...]   # [KB, 1]
    out_ref[...] = logit                                  # single consolidated store


# ----------------------------- wrapper ----------------------------------------
def t2s_listener_forward(item_ids, padded_tokens, params):
    # glue: embedding / feature-table gathers, padding mask, layout transposes
    emb = params["emb_table"][padded_tokens]                        # [B, T, E]
    emb_tm = jnp.transpose(emb, (1, 0, 2)).astype(jnp.float32)      # [T, B, E]
    emb_k = jnp.tile(emb_tm, (1, K, 1))                             # [T, KB, E], row k*B+b
    emb2 = emb_k.reshape(T * KB, E)                                 # [T*KB, E]

    lengths = (padded_tokens > 0).sum(axis=1)                       # [B]
    last_mask = (jnp.arange(T)[:, None] == (lengths - 1)[None, :])  # [T, B]
    last_mask = last_mask.astype(jnp.float32)
    mask_k = jnp.tile(last_mask, (1, K))                            # [T, KB]
    mask3 = jnp.broadcast_to(mask_k[:, :, None], (T, KB, H))        # [T, KB, H]

    pc_raw = params["pc_table"][item_ids]                           # [B, K, F_PC]
    pc_kb = jnp.transpose(pc_raw, (1, 0, 2)).reshape(KB, F_PC)      # [KB, F_PC]
    pc_kb = pc_kb.astype(jnp.float32)

    out = pl.pallas_call(
        t2s_listener_kernel,
        out_shape=jax.ShapeDtypeStruct((KB, 1), jnp.float32),
    )(emb2, mask3, pc_kb,
      params["w_pc"], params["b_pc"],
      params["w_ih"], params["w_hh"], params["b_lstm"],
      params["w1"], params["b1"], params["w2"], params["b2"])

    return out[:, 0].reshape(K, B).T                                # [B, K]


# ----------------------------- reference (pure JAX) ---------------------------
def reference_forward(item_ids, padded_tokens, p):
    emb = p["emb_table"][padded_tokens]                 # [B, T, E]
    lengths = (padded_tokens > 0).sum(axis=1)           # [B]
    pc_raw = p["pc_table"][item_ids]                    # [B, K, F_PC]
    pc_feats = pc_raw @ p["w_pc"] + p["b_pc"][0]        # [B, K, H]
    logits = []
    for i in range(K):
        h = pc_feats[:, i]
        c = pc_feats[:, i]
        h_last = jnp.zeros_like(h)
        for t in range(T):
            gates = emb[:, t] @ p["w_ih"] + h @ p["w_hh"] + p["b_lstm"][0]
            i_g = jax.nn.sigmoid(gates[:, :H])
            f_g = jax.nn.sigmoid(gates[:, H:2 * H])
            g_g = jnp.tanh(gates[:, 2 * H:3 * H])
            o_g = jax.nn.sigmoid(gates[:, 3 * H:])
            c = f_g * c + i_g * g_g
            h = o_g * jnp.tanh(c)
            h_last = jnp.where((lengths - 1 == t)[:, None], h, h_last)
        feats = jnp.concatenate([h_last, pc_feats[:, i]], axis=1)
        hid = jax.nn.relu(feats @ p["w1"] + p["b1"][0])
        logits.append(hid @ p["w2"] + p["b2"][0])
    return jnp.concatenate(logits, axis=1)              # [B, K]


# ----------------------------- deterministic params ---------------------------
def init_params(key):
    ks = jax.random.split(key, 11)
    s = 0.1
    return {
        "emb_table": s * jax.random.normal(ks[0], (VOCAB, E), jnp.float32),
        "pc_table":  s * jax.random.normal(ks[1], (N_ITEMS, F_PC), jnp.float32),
        "w_pc":      s * jax.random.normal(ks[2], (F_PC, H), jnp.float32),
        "b_pc":      s * jax.random.normal(ks[3], (1, H), jnp.float32),
        "w_ih":      s * jax.random.normal(ks[4], (E, 4 * H), jnp.float32),
        "w_hh":      s * jax.random.normal(ks[5], (H, 4 * H), jnp.float32),
        "b_lstm":    s * jax.random.normal(ks[6], (1, 4 * H), jnp.float32),
        "w1":        s * jax.random.normal(ks[7], (2 * H, D1), jnp.float32),
        "b1":        s * jax.random.normal(ks[8], (1, D1), jnp.float32),
        "w2":        s * jax.random.normal(ks[9], (D1, 1), jnp.float32),
        "b2":        s * jax.random.normal(ks[10], (1, 1), jnp.float32),
    }


if __name__ == "__main__":
    key = jax.random.PRNGKey(0)
    k_tok, k_len, k_items, k_param = jax.random.split(key, 4)

    padded_tokens = jax.random.randint(k_tok, (B, T), 1, VOCAB, dtype=jnp.int32)
    lengths = jax.random.randint(k_len, (B,), 3, T + 1, dtype=jnp.int32)
    padded_tokens = jnp.where(jnp.arange(T)[None, :] < lengths[:, None],
                              padded_tokens, 0)                      # 0 = pad token
    item_ids = jax.random.randint(k_items, (B, K), 0, N_ITEMS, dtype=jnp.int32)

    params = init_params(k_param)

    out = jax.block_until_ready(t2s_listener_forward(item_ids, padded_tokens, params))
    ref = jax.block_until_ready(reference_forward(item_ids, padded_tokens, params))

    assert out.shape == (B, K), out.shape
    assert jnp.allclose(out, ref, atol=1e-4, rtol=1e-4), (out, ref)
    print("KERNEL_OK")
</pallas_src>

<mosaic_0001>
module attributes {stable_mosaic.version = 11 : i64} {
  func.func @t2s_listener_kernel(%arg0: memref<96x16xf32, #tpu.memory_space<vmem>>, %arg1: memref<8x12x32xf32, #tpu.memory_space<vmem>>, %arg2: memref<12x64xf32, #tpu.memory_space<vmem>>, %arg3: memref<64x32xf32, #tpu.memory_space<vmem>>, %arg4: memref<1x32xf32, #tpu.memory_space<vmem>>, %arg5: memref<16x128xf32, #tpu.memory_space<vmem>>, %arg6: memref<32x128xf32, #tpu.memory_space<vmem>>, %arg7: memref<1x128xf32, #tpu.memory_space<vmem>>, %arg8: memref<64x64xf32, #tpu.memory_space<vmem>>, %arg9: memref<1x64xf32, #tpu.memory_space<vmem>>, %arg10: memref<64x1xf32, #tpu.memory_space<vmem>>, %arg11: memref<1x1xf32, #tpu.memory_space<vmem>>, %arg12: memref<12x1xf32, #tpu.memory_space<vmem>>) attributes {dimension_semantics = [], scalar_prefetch = 0 : i64, scratch_operands = 0 : i64, tpu.core_type = #tpu.core_type<tc>} {
    %c0 = arith.constant 0 : index
    %c0_0 = arith.constant 0 : index
    %0 = vector.load %arg2[%c0, %c0_0] : memref<12x64xf32, #tpu.memory_space<vmem>>, vector<12x64xf32>
    %c0_1 = arith.constant 0 : index
    %c0_2 = arith.constant 0 : index
    %1 = vector.load %arg3[%c0_1, %c0_2] : memref<64x32xf32, #tpu.memory_space<vmem>>, vector<64x32xf32>
    %cst = arith.constant dense<0.000000e+00> : vector<12x32xf32>
    %2 = tpu.matmul %0, %1, %cst {dimension_numbers = #tpu.dot_dimension_numbers<[1], [0], [0], [1], [0, 0, 1, 1], [], []>} : vector<12x64xf32>, vector<64x32xf32>, vector<12x32xf32> -> vector<12x32xf32>
    %c0_3 = arith.constant 0 : index
    %c0_4 = arith.constant 0 : index
    %3 = vector.load %arg4[%c0_3, %c0_4] : memref<1x32xf32, #tpu.memory_space<vmem>>, vector<1x32xf32>
    %4 = vector.broadcast %3 : vector<1x32xf32> to vector<12x32xf32>
    %5 = arith.addf %2, %4 : vector<12x32xf32>
    %c0_5 = arith.constant 0 : index
    %c0_6 = arith.constant 0 : index
    %6 = vector.load %arg0[%c0_5, %c0_6] : memref<96x16xf32, #tpu.memory_space<vmem>>, vector<96x16xf32>
    %c0_7 = arith.constant 0 : index
    %c0_8 = arith.constant 0 : index
    %7 = vector.load %arg5[%c0_7, %c0_8] : memref<16x128xf32, #tpu.memory_space<vmem>>, vector<16x128xf32>
    %cst_9 = arith.constant dense<0.000000e+00> : vector<96x128xf32>
    %8 = tpu.matmul %6, %7, %cst_9 {dimension_numbers = #tpu.dot_dimension_numbers<[1], [0], [0], [1], [0, 0, 1, 1], [], []>} : vector<96x16xf32>, vector<16x128xf32>, vector<96x128xf32> -> vector<96x128xf32>
    %c0_10 = arith.constant 0 : index
    %c0_11 = arith.constant 0 : index
    %9 = vector.load %arg7[%c0_10, %c0_11] : memref<1x128xf32, #tpu.memory_space<vmem>>, vector<1x128xf32>
    %10 = vector.broadcast %9 : vector<1x128xf32> to vector<96x128xf32>
    %11 = arith.addf %8, %10 : vector<96x128xf32>
    %c0_12 = arith.constant 0 : index
    %c0_13 = arith.constant 0 : index
    %12 = vector.load %arg6[%c0_12, %c0_13] : memref<32x128xf32, #tpu.memory_space<vmem>>, vector<32x128xf32>
    %cst_14 = arith.constant 0.000000e+00 : f32
    %13 = vector.broadcast %cst_14 : f32 to vector<12x32xf32>
    %14 = vector.extract_strided_slice %11 {offsets = [0, 0], sizes = [12, 128], strides = [1, 1]} : vector<96x128xf32> to vector<12x128xf32>
    %cst_15 = arith.constant dense<0.000000e+00> : vector<12x128xf32>
    %15 = tpu.matmul %5, %12, %cst_15 {dimension_numbers = #tpu.dot_dimension_numbers<[1], [0], [0], [1], [0, 0, 1, 1], [], []>} : vector<12x32xf32>, vector<32x128xf32>, vector<12x128xf32> -> vector<12x128xf32>
    %16 = arith.addf %14, %15 : vector<12x128xf32>
    %17 = arith.negf %16 : vector<12x128xf32>
    %18 = math.exp %17 : vector<12x128xf32>
    %cst_16 = arith.constant 1.000000e+00 : f32
    %19 = vector.broadcast %cst_16 : f32 to vector<12x128xf32>
    %20 = arith.addf %19, %18 : vector<12x128xf32>
    %21 = arith.divf %19, %20 : vector<12x128xf32>
    %22 = math.tanh %16 : vector<12x128xf32>
    %23 = vector.extract_strided_slice %21 {offsets = [0, 0], sizes = [12, 32], strides = [1, 1]} : vector<12x128xf32> to vector<12x32xf32>
    %24 = vector.extract_strided_slice %21 {offsets = [0, 32], sizes = [12, 32], strides = [1, 1]} : vector<12x128xf32> to vector<12x32xf32>
    %25 = vector.extract_strided_slice %21 {offsets = [0, 96], sizes = [12, 32], strides = [1, 1]} : vector<12x128xf32> to vector<12x32xf32>
    %26 = vector.extract_strided_slice %22 {offsets = [0, 64], sizes = [12, 32], strides = [1, 1]} : vector<12x128xf32> to vector<12x32xf32>
    %27 = arith.mulf %24, %5 : vector<12x32xf32>
    %28 = arith.mulf %23, %26 : vector<12x32xf32>
    %29 = arith.addf %27, %28 : vector<12x32xf32>
    %30 = math.tanh %29 : vector<12x32xf32>
    %31 = arith.mulf %25, %30 : vector<12x32xf32>
    %c0_17 = arith.constant 0 : index
    %c0_18 = arith.constant 0 : index
    %c0_19 = arith.constant 0 : index
    %32 = vector.load %arg1[%c0_17, %c0_18, %c0_19] : memref<8x12x32xf32, #tpu.memory_space<vmem>>, vector<1x12x32xf32>
    %33 = vector.shape_cast %32 : vector<1x12x32xf32> to vector<12x32xf32>
    %34 = arith.mulf %33, %31 : vector<12x32xf32>
    %35 = arith.addf %13, %34 : vector<12x32xf32>
    %36 = vector.extract_strided_slice %11 {offsets = [12, 0], sizes = [12, 128], strides = [1, 1]} : vector<96x128xf32> to vector<12x128xf32>
    %cst_20 = arith.constant dense<0.000000e+00> : vector<12x128xf32>
    %37 = tpu.matmul %31, %12, %cst_20 {dimension_numbers = #tpu.dot_dimension_numbers<[1], [0], [0], [1], [0, 0, 1, 1], [], []>} : vector<12x32xf32>, vector<32x128xf32>, vector<12x128xf32> -> vector<12x128xf32>
    %38 = arith.addf %36, %37 : vector<12x128xf32>
    %39 = arith.negf %38 : vector<12x128xf32>
    %40 = math.exp %39 : vector<12x128xf32>
    %cst_21 = arith.constant 1.000000e+00 : f32
    %41 = vector.broadcast %cst_21 : f32 to vector<12x128xf32>
    %42 = arith.addf %41, %40 : vector<12x128xf32>
    %43 = arith.divf %41, %42 : vector<12x128xf32>
    %44 = math.tanh %38 : vector<12x128xf32>
    %45 = vector.extract_strided_slice %43 {offsets = [0, 0], sizes = [12, 32], strides = [1, 1]} : vector<12x128xf32> to vector<12x32xf32>
    %46 = vector.extract_strided_slice %43 {offsets = [0, 32], sizes = [12, 32], strides = [1, 1]} : vector<12x128xf32> to vector<12x32xf32>
    %47 = vector.extract_strided_slice %43 {offsets = [0, 96], sizes = [12, 32], strides = [1, 1]} : vector<12x128xf32> to vector<12x32xf32>
    %48 = vector.extract_strided_slice %44 {offsets = [0, 64], sizes = [12, 32], strides = [1, 1]} : vector<12x128xf32> to vector<12x32xf32>
    %49 = arith.mulf %46, %29 : vector<12x32xf32>
    %50 = arith.mulf %45, %48 : vector<12x32xf32>
    %51 = arith.addf %49, %50 : vector<12x32xf32>
    %52 = math.tanh %51 : vector<12x32xf32>
    %53 = arith.mulf %47, %52 : vector<12x32xf32>
    %c1 = arith.constant 1 : index
    %c0_22 = arith.constant 0 : index
    %c0_23 = arith.constant 0 : index
    %54 = vector.load %arg1[%c1, %c0_22, %c0_23] : memref<8x12x32xf32, #tpu.memory_space<vmem>>, vector<1x12x32xf32>
    %55 = vector.shape_cast %54 : vector<1x12x32xf32> to vector<12x32xf32>
    %56 = arith.mulf %55, %53 : vector<12x32xf32>
    %57 = arith.addf %35, %56 : vector<12x32xf32>
    %58 = vector.extract_strided_slice %11 {offsets = [24, 0], sizes = [12, 128], strides = [1, 1]} : vector<96x128xf32> to vector<12x128xf32>
    %cst_24 = arith.constant dense<0.000000e+00> : vector<12x128xf32>
    %59 = tpu.matmul %53, %12, %cst_24 {dimension_numbers = #tpu.dot_dimension_numbers<[1], [0], [0], [1], [0, 0, 1, 1], [], []>} : vector<12x32xf32>, vector<32x128xf32>, vector<12x128xf32> -> vector<12x128xf32>
    %60 = arith.addf %58, %59 : vector<12x128xf32>
    %61 = arith.negf %60 : vector<12x128xf32>
    %62 = math.exp %61 : vector<12x128xf32>
    %cst_25 = arith.constant 1.000000e+00 : f32
    %63 = vector.broadcast %cst_25 : f32 to vector<12x128xf32>
    %64 = arith.addf %63, %62 : vector<12x128xf32>
    %65 = arith.divf %63, %64 : vector<12x128xf32>
    %66 = math.tanh %60 : vector<12x128xf32>
    %67 = vector.extract_strided_slice %65 {offsets = [0, 0], sizes = [12, 32], strides = [1, 1]} : vector<12x128xf32> to vector<12x32xf32>
    %68 = vector.extract_strided_slice %65 {offsets = [0, 32], sizes = [12, 32], strides = [1, 1]} : vector<12x128xf32> to vector<12x32xf32>
    %69 = vector.extract_strided_slice %65 {offsets = [0, 96], sizes = [12, 32], strides = [1, 1]} : vector<12x128xf32> to vector<12x32xf32>
    %70 = vector.extract_strided_slice %66 {offsets = [0, 64], sizes = [12, 32], strides = [1, 1]} : vector<12x128xf32> to vector<12x32xf32>
    %71 = arith.mulf %68, %51 : vector<12x32xf32>
    %72 = arith.mulf %67, %70 : vector<12x32xf32>
    %73 = arith.addf %71, %72 : vector<12x32xf32>
    %74 = math.tanh %73 : vector<12x32xf32>
    %75 = arith.mulf %69, %74 : vector<12x32xf32>
    %c2 = arith.constant 2 : index
    %c0_26 = arith.constant 0 : index
    %c0_27 = arith.constant 0 : index
    %76 = vector.load %arg1[%c2, %c0_26, %c0_27] : memref<8x12x32xf32, #tpu.memory_space<vmem>>, vector<1x12x32xf32>
    %77 = vector.shape_cast %76 : vector<1x12x32xf32> to vector<12x32xf32>
    %78 = arith.mulf %77, %75 : vector<12x32xf32>
    %79 = arith.addf %57, %78 : vector<12x32xf32>
    %80 = vector.extract_strided_slice %11 {offsets = [36, 0], sizes = [12, 128], strides = [1, 1]} : vector<96x128xf32> to vector<12x128xf32>
    %cst_28 = arith.constant dense<0.000000e+00> : vector<12x128xf32>
    %81 = tpu.matmul %75, %12, %cst_28 {dimension_numbers = #tpu.dot_dimension_numbers<[1], [0], [0], [1], [0, 0, 1, 1], [], []>} : vector<12x32xf32>, vector<32x128xf32>, vector<12x128xf32> -> vector<12x128xf32>
    %82 = arith.addf %80, %81 : vector<12x128xf32>
    %83 = arith.negf %82 : vector<12x128xf32>
    %84 = math.exp %83 : vector<12x128xf32>
    %cst_29 = arith.constant 1.000000e+00 : f32
    %85 = vector.broadcast %cst_29 : f32 to vector<12x128xf32>
    %86 = arith.addf %85, %84 : vector<12x128xf32>
    %87 = arith.divf %85, %86 : vector<12x128xf32>
    %88 = math.tanh %82 : vector<12x128xf32>
    %89 = vector.extract_strided_slice %87 {offsets = [0, 0], sizes = [12, 32], strides = [1, 1]} : vector<12x128xf32> to vector<12x32xf32>
    %90 = vector.extract_strided_slice %87 {offsets = [0, 32], sizes = [12, 32], strides = [1, 1]} : vector<12x128xf32> to vector<12x32xf32>
    %91 = vector.extract_strided_slice %87 {offsets = [0, 96], sizes = [12, 32], strides = [1, 1]} : vector<12x128xf32> to vector<12x32xf32>
    %92 = vector.extract_strided_slice %88 {offsets = [0, 64], sizes = [12, 32], strides = [1, 1]} : vector<12x128xf32> to vector<12x32xf32>
    %93 = arith.mulf %90, %73 : vector<12x32xf32>
    %94 = arith.mulf %89, %92 : vector<12x32xf32>
    %95 = arith.addf %93, %94 : vector<12x32xf32>
    %96 = math.tanh %95 : vector<12x32xf32>
    %97 = arith.mulf %91, %96 : vector<12x32xf32>
    %c3 = arith.constant 3 : index
    %c0_30 = arith.constant 0 : index
    %c0_31 = arith.constant 0 : index
    %98 = vector.load %arg1[%c3, %c0_30, %c0_31] : memref<8x12x32xf32, #tpu.memory_space<vmem>>, vector<1x12x32xf32>
    %99 = vector.shape_cast %98 : vector<1x12x32xf32> to vector<12x32xf32>
    %100 = arith.mulf %99, %97 : vector<12x32xf32>
    %101 = arith.addf %79, %100 : vector<12x32xf32>
    %102 = vector.extract_strided_slice %11 {offsets = [48, 0], sizes = [12, 128], strides = [1, 1]} : vector<96x128xf32> to vector<12x128xf32>
    %cst_32 = arith.constant dense<0.000000e+00> : vector<12x128xf32>
    %103 = tpu.matmul %97, %12, %cst_32 {dimension_numbers = #tpu.dot_dimension_numbers<[1], [0], [0], [1], [0, 0, 1, 1], [], []>} : vector<12x32xf32>, vector<32x128xf32>, vector<12x128xf32> -> vector<12x128xf32>
    %104 = arith.addf %102, %103 : vector<12x128xf32>
    %105 = arith.negf %104 : vector<12x128xf32>
    %106 = math.exp %105 : vector<12x128xf32>
    %cst_33 = arith.constant 1.000000e+00 : f32
    %107 = vector.broadcast %cst_33 : f32 to vector<12x128xf32>
    %108 = arith.addf %107, %106 : vector<12x128xf32>
    %109 = arith.divf %107, %108 : vector<12x128xf32>
    %110 = math.tanh %104 : vector<12x128xf32>
    %111 = vector.extract_strided_slice %109 {offsets = [0, 0], sizes = [12, 32], strides = [1, 1]} : vector<12x128xf32> to vector<12x32xf32>
    %112 = vector.extract_strided_slice %109 {offsets = [0, 32], sizes = [12, 32], strides = [1, 1]} : vector<12x128xf32> to vector<12x32xf32>
    %113 = vector.extract_strided_slice %109 {offsets = [0, 96], sizes = [12, 32], strides = [1, 1]} : vector<12x128xf32> to vector<12x32xf32>
    %114 = vector.extract_strided_slice %110 {offsets = [0, 64], sizes = [12, 32], strides = [1, 1]} : vector<12x128xf32> to vector<12x32xf32>
    %115 = arith.mulf %112, %95 : vector<12x32xf32>
    %116 = arith.mulf %111, %114 : vector<12x32xf32>
    %117 = arith.addf %115, %116 : vector<12x32xf32>
    %118 = math.tanh %117 : vector<12x32xf32>
    %119 = arith.mulf %113, %118 : vector<12x32xf32>
    %c4 = arith.constant 4 : index
    %c0_34 = arith.constant 0 : index
    %c0_35 = arith.constant 0 : index
    %120 = vector.load %arg1[%c4, %c0_34, %c0_35] : memref<8x12x32xf32, #tpu.memory_space<vmem>>, vector<1x12x32xf32>
    %121 = vector.shape_cast %120 : vector<1x12x32xf32> to vector<12x32xf32>
    %122 = arith.mulf %121, %119 : vector<12x32xf32>
    %123 = arith.addf %101, %122 : vector<12x32xf32>
    %124 = vector.extract_strided_slice %11 {offsets = [60, 0], sizes = [12, 128], strides = [1, 1]} : vector<96x128xf32> to vector<12x128xf32>
    %cst_36 = arith.constant dense<0.000000e+00> : vector<12x128xf32>
    %125 = tpu.matmul %119, %12, %cst_36 {dimension_numbers = #tpu.dot_dimension_numbers<[1], [0], [0], [1], [0, 0, 1, 1], [], []>} : vector<12x32xf32>, vector<32x128xf32>, vector<12x128xf32> -> vector<12x128xf32>
    %126 = arith.addf %124, %125 : vector<12x128xf32>
    %127 = arith.negf %126 : vector<12x128xf32>
    %128 = math.exp %127 : vector<12x128xf32>
    %cst_37 = arith.constant 1.000000e+00 : f32
    %129 = vector.broadcast %cst_37 : f32 to vector<12x128xf32>
    %130 = arith.addf %129, %128 : vector<12x128xf32>
    %131 = arith.divf %129, %130 : vector<12x128xf32>
    %132 = math.tanh %126 : vector<12x128xf32>
    %133 = vector.extract_strided_slice %131 {offsets = [0, 0], sizes = [12, 32], strides = [1, 1]} : vector<12x128xf32> to vector<12x32xf32>
    %134 = vector.extract_strided_slice %131 {offsets = [0, 32], sizes = [12, 32], strides = [1, 1]} : vector<12x128xf32> to vector<12x32xf32>
    %135 = vector.extract_strided_slice %131 {offsets = [0, 96], sizes = [12, 32], strides = [1, 1]} : vector<12x128xf32> to vector<12x32xf32>
    %136 = vector.extract_strided_slice %132 {offsets = [0, 64], sizes = [12, 32], strides = [1, 1]} : vector<12x128xf32> to vector<12x32xf32>
    %137 = arith.mulf %134, %117 : vector<12x32xf32>
    %138 = arith.mulf %133, %136 : vector<12x32xf32>
    %139 = arith.addf %137, %138 : vector<12x32xf32>
    %140 = math.tanh %139 : vector<12x32xf32>
    %141 = arith.mulf %135, %140 : vector<12x32xf32>
    %c5 = arith.constant 5 : index
    %c0_38 = arith.constant 0 : index
    %c0_39 = arith.constant 0 : index
    %142 = vector.load %arg1[%c5, %c0_38, %c0_39] : memref<8x12x32xf32, #tpu.memory_space<vmem>>, vector<1x12x32xf32>
    %143 = vector.shape_cast %142 : vector<1x12x32xf32> to vector<12x32xf32>
    %144 = arith.mulf %143, %141 : vector<12x32xf32>
    %145 = arith.addf %123, %144 : vector<12x32xf32>
    %146 = vector.extract_strided_slice %11 {offsets = [72, 0], sizes = [12, 128], strides = [1, 1]} : vector<96x128xf32> to vector<12x128xf32>
    %cst_40 = arith.constant dense<0.000000e+00> : vector<12x128xf32>
    %147 = tpu.matmul %141, %12, %cst_40 {dimension_numbers = #tpu.dot_dimension_numbers<[1], [0], [0], [1], [0, 0, 1, 1], [], []>} : vector<12x32xf32>, vector<32x128xf32>, vector<12x128xf32> -> vector<12x128xf32>
    %148 = arith.addf %146, %147 : vector<12x128xf32>
    %149 = arith.negf %148 : vector<12x128xf32>
    %150 = math.exp %149 : vector<12x128xf32>
    %cst_41 = arith.constant 1.000000e+00 : f32
    %151 = vector.broadcast %cst_41 : f32 to vector<12x128xf32>
    %152 = arith.addf %151, %150 : vector<12x128xf32>
    %153 = arith.divf %151, %152 : vector<12x128xf32>
    %154 = math.tanh %148 : vector<12x128xf32>
    %155 = vector.extract_strided_slice %153 {offsets = [0, 0], sizes = [12, 32], strides = [1, 1]} : vector<12x128xf32> to vector<12x32xf32>
    %156 = vector.extract_strided_slice %153 {offsets = [0, 32], sizes = [12, 32], strides = [1, 1]} : vector<12x128xf32> to vector<12x32xf32>
    %157 = vector.extract_strided_slice %153 {offsets = [0, 96], sizes = [12, 32], strides = [1, 1]} : vector<12x128xf32> to vector<12x32xf32>
    %158 = vector.extract_strided_slice %154 {offsets = [0, 64], sizes = [12, 32], strides = [1, 1]} : vector<12x128xf32> to vector<12x32xf32>
    %159 = arith.mulf %156, %139 : vector<12x32xf32>
    %160 = arith.mulf %155, %158 : vector<12x32xf32>
    %161 = arith.addf %159, %160 : vector<12x32xf32>
    %162 = math.tanh %161 : vector<12x32xf32>
    %163 = arith.mulf %157, %162 : vector<12x32xf32>
    %c6 = arith.constant 6 : index
    %c0_42 = arith.constant 0 : index
    %c0_43 = arith.constant 0 : index
    %164 = vector.load %arg1[%c6, %c0_42, %c0_43] : memref<8x12x32xf32, #tpu.memory_space<vmem>>, vector<1x12x32xf32>
    %165 = vector.shape_cast %164 : vector<1x12x32xf32> to vector<12x32xf32>
    %166 = arith.mulf %165, %163 : vector<12x32xf32>
    %167 = arith.addf %145, %166 : vector<12x32xf32>
    %168 = vector.extract_strided_slice %11 {offsets = [84, 0], sizes = [12, 128], strides = [1, 1]} : vector<96x128xf32> to vector<12x128xf32>
    %cst_44 = arith.constant dense<0.000000e+00> : vector<12x128xf32>
    %169 = tpu.matmul %163, %12, %cst_44 {dimension_numbers = #tpu.dot_dimension_numbers<[1], [0], [0], [1], [0, 0, 1, 1], [], []>} : vector<12x32xf32>, vector<32x128xf32>, vector<12x128xf32> -> vector<12x128xf32>
    %170 = arith.addf %168, %169 : vector<12x128xf32>
    %171 = arith.negf %170 : vector<12x128xf32>
    %172 = math.exp %171 : vector<12x128xf32>
    %cst_45 = arith.constant 1.000000e+00 : f32
    %173 = vector.broadcast %cst_45 : f32 to vector<12x128xf32>
    %174 = arith.addf %173, %172 : vector<12x128xf32>
    %175 = arith.divf %173, %174 : vector<12x128xf32>
    %176 = math.tanh %170 : vector<12x128xf32>
    %177 = vector.extract_strided_slice %175 {offsets = [0, 0], sizes = [12, 32], strides = [1, 1]} : vector<12x128xf32> to vector<12x32xf32>
    %178 = vector.extract_strided_slice %175 {offsets = [0, 32], sizes = [12, 32], strides = [1, 1]} : vector<12x128xf32> to vector<12x32xf32>
    %179 = vector.extract_strided_slice %175 {offsets = [0, 96], sizes = [12, 32], strides = [1, 1]} : vector<12x128xf32> to vector<12x32xf32>
    %180 = vector.extract_strided_slice %176 {offsets = [0, 64], sizes = [12, 32], strides = [1, 1]} : vector<12x128xf32> to vector<12x32xf32>
    %181 = arith.mulf %178, %161 : vector<12x32xf32>
    %182 = arith.mulf %177, %180 : vector<12x32xf32>
    %183 = arith.addf %181, %182 : vector<12x32xf32>
    %184 = math.tanh %183 : vector<12x32xf32>
    %185 = arith.mulf %179, %184 : vector<12x32xf32>
    %c7 = arith.constant 7 : index
    %c0_46 = arith.constant 0 : index
    %c0_47 = arith.constant 0 : index
    %186 = vector.load %arg1[%c7, %c0_46, %c0_47] : memref<8x12x32xf32, #tpu.memory_space<vmem>>, vector<1x12x32xf32>
    %187 = vector.shape_cast %186 : vector<1x12x32xf32> to vector<12x32xf32>
    %188 = arith.mulf %187, %185 : vector<12x32xf32>
    %189 = arith.addf %167, %188 : vector<12x32xf32>
    %c0_48 = arith.constant 0 : index
    %c0_49 = arith.constant 0 : index
    %190 = vector.load %arg8[%c0_48, %c0_49] : memref<64x64xf32, #tpu.memory_space<vmem>>, vector<32x64xf32>
    %cst_50 = arith.constant dense<0.000000e+00> : vector<12x64xf32>
    %191 = tpu.matmul %189, %190, %cst_50 {dimension_numbers = #tpu.dot_dimension_numbers<[1], [0], [0], [1], [0, 0, 1, 1], [], []>} : vector<12x32xf32>, vector<32x64xf32>, vector<12x64xf32> -> vector<12x64xf32>
    %c32 = arith.constant 32 : index
    %c0_51 = arith.constant 0 : index
    %192 = vector.load %arg8[%c32, %c0_51] : memref<64x64xf32, #tpu.memory_space<vmem>>, vector<32x64xf32>
    %cst_52 = arith.constant dense<0.000000e+00> : vector<12x64xf32>
    %193 = tpu.matmul %5, %192, %cst_52 {dimension_numbers = #tpu.dot_dimension_numbers<[1], [0], [0], [1], [0, 0, 1, 1], [], []>} : vector<12x32xf32>, vector<32x64xf32>, vector<12x64xf32> -> vector<12x64xf32>
    %194 = arith.addf %191, %193 : vector<12x64xf32>
    %c0_53 = arith.constant 0 : index
    %c0_54 = arith.constant 0 : index
    %195 = vector.load %arg9[%c0_53, %c0_54] : memref<1x64xf32, #tpu.memory_space<vmem>>, vector<1x64xf32>
    %196 = vector.broadcast %195 : vector<1x64xf32> to vector<12x64xf32>
    %197 = arith.addf %194, %196 : vector<12x64xf32>
    %cst_55 = arith.constant 0.000000e+00 : f32
    %198 = vector.broadcast %cst_55 : f32 to vector<12x64xf32>
    %199 = arith.maximumf %197, %198 : vector<12x64xf32>
    %c0_56 = arith.constant 0 : index
    %c0_57 = arith.constant 0 : index
    %200 = vector.load %arg10[%c0_56, %c0_57] : memref<64x1xf32, #tpu.memory_space<vmem>>, vector<64x1xf32>
    %cst_58 = arith.constant dense<0.000000e+00> : vector<12x1xf32>
    %201 = tpu.matmul %199, %200, %cst_58 {dimension_numbers = #tpu.dot_dimension_numbers<[1], [0], [0], [1], [0, 0, 1, 1], [], []>} : vector<12x64xf32>, vector<64x1xf32>, vector<12x1xf32> -> vector<12x1xf32>
    %c0_59 = arith.constant 0 : index
    %c0_60 = arith.constant 0 : index
    %202 = vector.load %arg11[%c0_59, %c0_60] : memref<1x1xf32, #tpu.memory_space<vmem>>, vector<1x1xf32>
    %203 = vector.broadcast %202 : vector<1x1xf32> to vector<12x1xf32>
    %204 = arith.addf %201, %203 : vector<12x1xf32>
    %c0_61 = arith.constant 0 : index
    %c0_62 = arith.constant 0 : index
    %205 = vector.load %arg12[%c0_61, %c0_62] : memref<12x1xf32, #tpu.memory_space<vmem>>, vector<12x1xf32>
    tpu.vector_store %arg12[%c0_61, %c0_62], %204 {strides = array<i32>} : memref<12x1xf32, #tpu.memory_space<vmem>>, vector<12x1xf32>,
    return
  }
}

</mosaic_0001>

<bundles_post_ra>
// kernel: tpu_custom_call.1
= control target key start
LH: loop header
LB: loop body
LE: loop exit
PB: predicated region body
PF: predicated region fallthrough
CT: control target
= control target key end

     0   :  { %vm60_vm0 = vcmask 523264   ;;  %vm163_vm1 = vcmask 130048   ;;  %vm329_vm2 = vcmask 261120   ;;  %s2440_s19 = smov 32   ;;  %s2441_s21 = smov 64   ;;  %vm562_vm3 = vcmask 1043456   ;;  %s2995_s3 = inlined_call_operand.vmem [shape: f32[64,32], index: 3, kind: input, shape index: {}]   ;;  %s2996_s2 = inlined_call_operand.vmem [shape: f32[12,64], index: 2, kind: input, shape index: {}]   ;;  %s2997_s6 = inlined_call_operand.vmem [shape: f32[32,128], index: 6, kind: input, shape index: {}]   ;;  %s2998_s5 = inlined_call_operand.vmem [shape: f32[16,128], index: 5, kind: input, shape index: {}]   ;;  %s2999_s0 = inlined_call_operand.vmem [shape: f32[96,16], index: 0, kind: input, shape index: {}]   ;;  %s3000_s4 = inlined_call_operand.vmem [shape: f32[1,32], index: 4, kind: input, shape index: {}]   ;;  %s3001_s7 = inlined_call_operand.vmem [shape: f32[1,128], index: 7, kind: input, shape index: {}]   ;;  %s3002_s8 = inlined_call_operand.vmem [shape: f32[64,64], index: 8, kind: input, shape index: {}]   ;;  %s3003_s10 = inlined_call_operand.vmem [shape: f32[64,1], index: 10, kind: input, shape index: {}]   ;;  %s3004_s1 = inlined_call_operand.vmem [shape: f32[8,12,32], index: 1, kind: input, shape index: {}]   ;;  %s3005_s11 = inlined_call_operand.<no memory space> [shape: f32[1,1], index: 11, kind: input, shape index: {}]   ;;  %s3006_s9 = inlined_call_operand.vmem [shape: f32[1,64], index: 9, kind: input, shape index: {}]   ;;  %s3007_s12 = inlined_call_operand.vmem [shape: f32[12,1], index: 12, kind: output, shape index: {}]  }
   0x1   :  { %v45_v0 = vld [vmem:[%s2995_s3] sm:$0xff]  ;;  %v46_v1 = vld [vmem:[%s2995_s3 + $0x8] sm:$0xff]  ;;  %v47_v2 = vld [vmem:[%s2995_s3 + $0x10] sm:$0xff]  ;;  %vm1852_vm4 = vcmask 3072   ;;  %vm1850_vm5 = vcmask 7168  }
   0x2   :  { %v2192_v3 = vpack.c.bf16 %v46_v1, %v45_v0  ;;  %v48_v4 = vld [vmem:[%s2995_s3 + $0x18] sm:$0xff]  ;;  %v49_v6 = vld [vmem:[%s2995_s3 + $0x20] sm:$0xff]  ;;  %v50_v7 = vld [vmem:[%s2995_s3 + $0x28] sm:$0xff] }
   0x3   :  { %v2196_v5 = vpack.c.bf16 %v48_v4, %v47_v2  ;;  %v43_v8 = vld [vmem:[%s2996_s2] sm:$0xff]  ;;  %v326_v10 = vld [vmem:[%s2997_s6 + $0x8] sm:$0xff]  ;;  %v2200_v13 = vpack.c.bf16 %v50_v7, %v49_v6  ;;  %v51_v15 = vld [vmem:[%s2995_s3 + $0x30] sm:$0xff] }
   0x4   :  { %2193 = vmatprep.subr.bf16.mxu0 %v2192_v3  ;;  %2038 = vmatprep.mubr.msk.f32.mxu0 %vm60_vm0, %v43_v8  ;;  %v325_v9 = vld [vmem:[%s2997_s6] sm:$0xff]  ;;  %v155_v12 = vld [vmem:[%s2998_s5 + $0x8] sm:$0xff]  ;;  %v52_v16 = vld [vmem:[%s2995_s3 + $0x38] sm:$0xff] }
   0x5   :  { %2195 = vmatpush3.bf16.msra.mxu0 %v2192_v3  ;;  %v154_v11 = vld [vmem:[%s2998_s5] sm:$0xff]  ;;  %v2547_v17 = vpack.c.bf16 %v326_v10, %v325_v9  ;;  %v2204_v18 = vpack.c.bf16 %v52_v16, %v51_v15  ;;  %v44_v19 = vld [vmem:[%s2996_s2 + $0x8] sm:$0xf]  ;;  %v327_v20 = vld [vmem:[%s2997_s6 + $0x10] sm:$0xff] }
   0x6   :  { %2197 = vmatprep.subr.bf16.mxu0 %v2196_v5  ;;  %v2208_v14 = vpack.c.bf16 %v155_v12, %v154_v11  ;;  %v328_v21 = vld [vmem:[%s2997_s6 + $0x18] sm:$0xff]  ;;  %v142_v23 = vld [vmem:[%s2999_s0] sm:$0xff]  ;;  %v143_v24 = vld [vmem:[%s2999_s0 + $0x8] sm:$0xff] }
   0x7   :  { %v2562_v22 = vpack.c.bf16 %v328_v21, %v327_v20  ;;  %2045 = vmatprep.mubr.msk.f32.mxu1 %vm163_vm1, %v142_v23  ;;  %v1858_v25 = vld [vmem:[%s3000_s4] ss:$0 sm:$0xff]  ;;  %v144_v63 = vld [vmem:[%s2999_s0 + $0x10] sm:$0xff]  ;;  %v145_v0 = vld [vmem:[%s2999_s0 + $0x18] sm:$0xff] }
   0x8   :  { %2209 = vmatprep.subr.bf16.mxu1 %v2208_v14  ;;  %v2601_v32 = vld [vmem:[%s3001_s7] ss:$0 sm:$0xff]  ;;  %v147_v3 = vld [vmem:[%s2999_s0 + $0x28] sm:$0xff]  ;;  %v148_v4 = vld [vmem:[%s2999_s0 + $0x30] sm:$0xff] }
   0x9   :  { %2199 = vmatpush3.bf16.msra.mxu0 %v2196_v5  ;;  %2211 = vmatpush3.bf16.msra.mxu1 %v2208_v14  ;;  %v146_v1 = vld [vmem:[%s2999_s0 + $0x20] sm:$0xff]  ;;  %v149_v6 = vld [vmem:[%s2999_s0 + $0x38] sm:$0xff]  ;;  %v151_v9 = vld [vmem:[%s2999_s0 + $0x48] sm:$0xff] }
   0xa   :  { %2201 = vmatprep.subr.bf16.mxu0 %v2200_v13  ;;  %2221 = vmatprep.subr.bf16.mxu1 %v2547_v17  ;;  %v150_v7 = vld [vmem:[%s2999_s0 + $0x40] sm:$0xff]  ;;  %v152_v10 = vld [vmem:[%s2999_s0 + $0x50] sm:$0xff]  ;;  %v153_v11 = vld [vmem:[%s2999_s0 + $0x58] sm:$0xff] }
   0xc   :  { %2046 = vmatmul.mubr.msk.f32.vlgmr.msra.gmra.mrb[0].mxu1 %vm163_vm1, %v143_v24 }
   0xd   :  { %2203 = vmatpush3.bf16.msra.mxu0 %v2200_v13  ;;  %2223 = vmatpush3.bf16.msra.mxu1 %v2547_v17 }
   0xe   :  { %2205 = vmatprep.subr.bf16.mxu0 %v2204_v18  ;;  %2225 = vmatprep.subr.bf16.mxu1 %v2562_v22 }
   0xf   :  { %2048 = vmatprep.mubr.msk.f32.mxu1 %vm163_vm1, %v144_v63 }
  0x10   :  { %2049 = vmatmul.mubr.msk.f32.gmra.mrb[2].mxu1 %vm163_vm1, %v145_v0 }
  0x11   :  { %2207 = vmatpush3.bf16.msra.mxu0 %v2204_v18  ;;  %2227 = vmatpush3.bf16.msra.mxu1 %v2562_v22 }
  0x12   :  { %2213 = vmatprep.subr.bf16.mxu0 %v2547_v17  ;;  %2237 = vmatprep.subr.bf16.mxu1 %v2547_v17 }
  0x13   :  { %2051 = vmatprep.mubr.msk.f32.mxu1 %vm163_vm1, %v146_v1 }
  0x14   :  { %2039 = vmatmul.mubr.msk.f32.vlgmr.msra.gmra.mrb[0].mxu0 %vm60_vm0, %v44_v19  ;;  %2052 = vmatmul.mubr.msk.f32.gmra.mrb[4].mxu1 %vm163_vm1, %v147_v3 }
  0x15   :  { %2215 = vmatpush3.bf16.msra.mxu0 %v2547_v17  ;;  %2054 = vmatprep.mubr.msk.f32.mxu1 %vm163_vm1, %v148_v4 }
  0x16   :  { %2217 = vmatprep.subr.bf16.mxu0 %v2562_v22 }
  0x18   :  { %2055 = vmatmul.mubr.msk.f32.gmra.mrb[6].mxu1 %vm163_vm1, %v149_v6 }
  0x19   :  { %2219 = vmatpush3.bf16.msra.mxu0 %v2562_v22  ;;  %2057 = vmatprep.mubr.msk.f32.mxu1 %vm163_vm1, %v150_v7 }
  0x1a   :  { %2229 = vmatprep.subr.bf16.mxu0 %v2547_v17 }
  0x1c   :  { %2058 = vmatmul.mubr.msk.f32.gmra.mrb[8].mxu1 %vm163_vm1, %v151_v9 }
  0x1d   :  { %2060 = vmatprep.mubr.msk.f32.mxu1 %vm163_vm1, %v152_v10 }
  0x20   :  { %2061 = vmatmul.mubr.msk.f32.gmra.mrb[10].mxu1 %vm163_vm1, %v153_v11 }
  0xdf   :  { %v2047_v30 = vpop.f32.mrb[0].mxu1 }
  0xe0   :  { %v266_v31 = vpop.f32.mrb[1].mxu1  ;;  %v2605_v34 = vadd.f32 %v2047_v30, %v2601_v32 }
  0xe1   :  { %v267_v33 = vadd.f32 %v2601_v32, %v266_v31 }
  0xe3   :  { %v2665_v16 = vpop.f32.mrb[2].mxu1 }
  0xe4   :  { %v276_v18 = vpop.f32.mrb[3].mxu1 }
  0xe7   :  { %v2040_v26 = vpop.f32.mrb[0].mxu0  ;;  %v2667_v19 = vpop.f32.mrb[4].mxu1 }
  0xe8   :  { %v133_v27 = vpop.f32.mrb[1].mxu0  ;;  %v2584_v29 = vadd.f32 %v2040_v26, %v1858_v25  ;;  %v2669_v20 = vpop.f32.mrb[5].mxu1 }
  0xe9   :  { %v2582_v28 = vadd.f32 %v1858_v25, %v133_v27  ;;  %v2725_v11 = vadd.f32 %v2601_v32, %v2669_v20 }
  0xeb   :  { %427 = vrot.lane.b32.xlu1 %v2582_v28, %s2440_s19  ;;  %2071 = vmatprep.mubr.msk.f32.mxu0 %vm329_vm2, %v2582_v28  ;;  %v2671_v21 = vpop.f32.mrb[6].mxu1 }
  0xec   :  { %2072 = vmatmul.mubr.msk.f32.vlgmr.msra.gmra.mrb[2].mxu0 %vm329_vm2, %v2584_v29  ;;  %v2673_v23 = vpop.f32.mrb[7].mxu1 }
  0xed   :  { %2231 = vmatpush3.bf16.msra.mxu0 %v2547_v17 }
  0xee   :  { %2233 = vmatprep.subr.bf16.mxu0 %v2562_v22 }
  0xef   :  { %429 = vrot.lane.b32.xlu1 %v2584_v29, %s2440_s19  ;;  %v2675_v24 = vpop.f32.mrb[8].mxu1 }
  0xf0   :  { %v2677_v25 = vpop.f32.mrb[9].mxu1 }
  0xf1   :  { %2235 = vmatpush3.bf16.msra.mxu0 %v2562_v22 }
  0xf2   :  { %2245 = vmatprep.subr.bf16.mxu0 %v2547_v17 }
  0xf3   :  { %v2679_v26 = vpop.f32.mrb[10].mxu1 }
  0xf4   :  { %v2681_v27 = vpop.f32.mrb[11].mxu1 }
 0x15d   :  { %v428_v53 = vpop.permute.xlu1 %427 }
 0x161   :  { %v430_v55 = vpop.permute.xlu1 %429 }
 0x1bf   :  { %v2073_v35 = vpop.f32.mrb[2].mxu0 }
 0x1c0   :  { %v402_v36 = vpop.f32.mrb[3].mxu0  ;;  %v412_v38 = vadd.f32 %v2073_v35, %v2605_v34 }
 0x1c1   :  { %v411_v37 = vadd.f32 %v402_v36, %v267_v33 }
 0x1c2   :  { %v1877_v42 = vmul.f32 -1.442695, %v412_v38 }
 0x1c3   :  { %2312 = vtanh.f32 %v411_v37  ;;  %v1876_v41 = vmul.f32 -1.442695, %v411_v37 }
 0x1c4   :  { %2314 = vtanh.f32 %v412_v38  ;;  %v277_v38 = vadd.f32 %v2601_v32, %v276_v18 }
 0x1c5   :  { %2316 = vpow2.f32 %v1876_v41 }
 0x1c6   :  { %2318 = vpow2.f32 %v1877_v42 }
 0x1cd   :  { %v2313_v39 = vpop.eup %2312 }
 0x1ce   :  { %437 = vrot.lane.b32.xlu0 %v2313_v39, %s2441_s21  ;;  %v2315_v40 = vpop.eup %2314 }
 0x1cf   :  { %v2317_v43 = vpop.eup %2316 }
 0x1d0   :  { %v419_v44 = vadd.f32 1.0, %v2317_v43  ;;  %v2319_v45 = vpop.eup %2318 }
 0x1d1   :  { %v420_v46 = vadd.f32 1.0, %v2319_v45 }
 0x1d2   :  { %439 = vrot.lane.b32.xlu0 %v2315_v40, %s2441_s21  ;;  %2320 = vrcp.f32 %v419_v44 }
 0x1d3   :  { %2322 = vrcp.f32 %v420_v46 }
 0x1dc   :  { %v2321_v47 = vpop.eup %2320 }
 0x1dd   :  { %v2323_v50 = vpop.eup %2322  ;;  %v433_v54 = vmul.f32 %v2321_v47, %v428_v53 }
 0x1de   :  { %v434_v58 = vmul.f32 %v2323_v50, %v430_v55 }
 0x240   :  { %v438_v48 = vpop.permute.xlu0 %437 }
 0x241   :  { %v443_v49 = vmul.f32 %v2321_v47, %v438_v48 }
 0x243   :  { %447 = vrot.lane.b32.xlu0 %v443_v49, %s2440_s19 }
 0x244   :  { %v440_v51 = vpop.permute.xlu0 %439 }
 0x245   :  { %v444_v52 = vmul.f32 %v2323_v50, %v440_v51 }
 0x247   :  { %449 = vrot.lane.b32.xlu1 %v444_v52, %s2440_s19 }
 0x2b5   :  { %v448_v56 = vpop.permute.xlu0 %447 }
 0x2b6   :  { %v2612_v57 = vadd.f32 %v448_v56, %v433_v54 }
 0x2b8   :  { %2324 = vtanh.f32 %v2612_v57  ;;  %v586_v61 = vrot.slane %v2612_v57, 4 }
 0x2b9   :  { %v450_v59 = vpop.permute.xlu1 %449 }
 0x2ba   :  { %v454_v60 = vadd.f32 %v450_v59, %v434_v58 }
 0x2bc   :  { %2326 = vtanh.f32 %v454_v60  ;;  %v587_v62 = vrot.slane %v454_v60, 4 }
 0x2be   :  { %v2630_v2 = vsel %vm562_vm3, %v586_v61, %v587_v62 }
 0x2c2   :  { %v2325_v5 = vpop.eup %2324 }
 0x2c3   :  { %459 = vrot.lane.b32.xlu0 %v2325_v5, %s2441_s21 }
 0x2c6   :  { %v2327_v8 = vpop.eup %2326 }
 0x2c7   :  { %461 = vrot.lane.b32.xlu1 %v2327_v8, %s2441_s21 }
 0x335   :  { %v460_v12 = vpop.permute.xlu0 %459 }
 0x336   :  { %v465_v13 = vmul.f32 %v2321_v47, %v460_v12  ;;  %v282_v12 = vadd.f32 %v2665_v16, %v2601_v32 }
 0x338   :  { %471 = vrot.lane.b32.xlu0 %v465_v13, %s2440_s19 }
 0x339   :  { %v462_v14 = vpop.permute.xlu1 %461 }
 0x33a   :  { %v466_v15 = vmul.f32 %v2323_v50, %v462_v14 }
 0x33c   :  { %473 = vrot.lane.b32.xlu1 %v466_v15, %s2440_s19 }
 0x3aa   :  { %v2683_v30 = vpop.permute.xlu0 %471 }
 0x3ab   :  { %2082 = vmatprep.mubr.msk.f32.mxu1 %vm329_vm2, %v2683_v30 }
 0x3ae   :  { %v2687_v31 = vpop.permute.xlu1 %473 }
 0x3af   :  { %2083 = vmatmul.mubr.msk.f32.vlgmr.msra.gmra.mrb[12].mxu1 %vm329_vm2, %v2687_v31 }
 0x3b0   :  { %2239 = vmatpush3.bf16.msra.mxu1 %v2547_v17 }
 0x3b1   :  { %2241 = vmatprep.subr.bf16.mxu1 %v2562_v22 }
 0x3b4   :  { %2243 = vmatpush3.bf16.msra.mxu1 %v2562_v22 }
 0x3b5   :  { %2253 = vmatprep.subr.bf16.mxu1 %v2547_v17 }
 0x482   :  { %v2084_v33 = vpop.f32.mrb[12].mxu1 }
 0x483   :  { %v564_v35 = vrot.slane %v2084_v33, 4  ;;  %v551_v36 = vpop.f32.mrb[13].mxu1 }
 0x484   :  { %v563_v37 = vrot.slane %v551_v36, 4 }
 0x486   :  { %v565_v39 = vsel %vm562_vm3, %v563_v37, %v564_v35  ;;  %v568_v40 = vadd.f32 %v563_v37, %v2605_v34 }
 0x487   :  { %v569_v41 = vadd.f32 %v565_v39, %v277_v38 }
 0x488   :  { %2328 = vtanh.f32 %v568_v40  ;;  %v1880_v44 = vmul.f32 -1.442695, %v568_v40 }
 0x489   :  { %2330 = vtanh.f32 %v569_v41  ;;  %v1881_v45 = vmul.f32 -1.442695, %v569_v41 }
 0x48a   :  { %2332 = vpow2.f32 %v1880_v44 }
 0x48b   :  { %2334 = vpow2.f32 %v1881_v45 }
 0x492   :  { %v2329_v42 = vpop.eup %2328 }
 0x493   :  { %v2331_v43 = vpop.eup %2330  ;;  %595 = vrot.lane.b32.xlu0 %v2329_v42, %s2441_s21 }
 0x494   :  { %597 = vrot.lane.b32.xlu1 %v2331_v43, %s2441_s21  ;;  %v2333_v46 = vpop.eup %2332 }
 0x495   :  { %v2335_v47 = vpop.eup %2334  ;;  %v576_v48 = vadd.f32 1.0, %v2333_v46 }
 0x496   :  { %v577_v49 = vadd.f32 1.0, %v2335_v47 }
 0x497   :  { %2336 = vrcp.f32 %v576_v48 }
 0x498   :  { %2338 = vrcp.f32 %v577_v49 }
 0x4a1   :  { %v2337_v34 = vpop.eup %2336 }
 0x4a2   :  { %v2339_v51 = vpop.eup %2338  ;;  %v591_v55 = vmul.f32 %v2337_v34, %v586_v61 }
 0x4a3   :  { %v592_v58 = vmul.f32 %v2339_v51, %v2630_v2 }
 0x505   :  { %v596_v50 = vpop.permute.xlu0 %595 }
 0x506   :  { %v601_v52 = vmul.f32 %v2337_v34, %v596_v50  ;;  %v598_v53 = vpop.permute.xlu1 %597 }
 0x507   :  { %v602_v54 = vmul.f32 %v2339_v51, %v598_v53 }
 0x508   :  { %605 = vrot.lane.b32.xlu0 %v601_v52, %s2440_s19 }
 0x509   :  { %607 = vrot.lane.b32.xlu1 %v602_v54, %s2440_s19 }
 0x57a   :  { %v606_v56 = vpop.permute.xlu0 %605 }
 0x57b   :  { %v611_v59 = vadd.f32 %v606_v56, %v591_v55  ;;  %v608_v60 = vpop.permute.xlu1 %607 }
 0x57c   :  { %v612_v62 = vadd.f32 %v608_v60, %v592_v58 }
 0x57d   :  { %2340 = vtanh.f32 %v611_v59  ;;  %v740_v63 = vrot.slane %v611_v59, 4 }
 0x57e   :  { %2342 = vtanh.f32 %v612_v62  ;;  %v741_v0 = vrot.slane %v612_v62, 4 }
 0x580   :  { %v742_v1 = vsel %vm562_vm3, %v740_v63, %v741_v0 }
 0x587   :  { %v2341_v3 = vpop.eup %2340 }
 0x588   :  { %v2343_v4 = vpop.eup %2342  ;;  %617 = vrot.lane.b32.xlu0 %v2341_v3, %s2441_s21 }
 0x589   :  { %619 = vrot.lane.b32.xlu1 %v2343_v4, %s2441_s21 }
 0x5fa   :  { %v618_v57 = vpop.permute.xlu0 %617 }
 0x5fb   :  { %v623_v61 = vmul.f32 %v2337_v34, %v618_v57  ;;  %v620_v5 = vpop.permute.xlu1 %619  ;;  %v292_v57 = vadd.f32 %v2667_v19, %v2601_v32 }
 0x5fc   :  { %v624_v6 = vmul.f32 %v2339_v51, %v620_v5 }
 0x5fd   :  { %v630_v2 = vrot.slane %v623_v61, 4 }
 0x5fe   :  { %v631_v7 = vrot.slane %v624_v6, 4 }
 0x600   :  { %635 = vrot.lane.b32.xlu1 %v631_v7, %s2440_s19  ;;  %v632_v8 = vsel %vm562_vm3, %v630_v2, %v631_v7 }
 0x601   :  { %633 = vrot.lane.b32.xlu0 %v632_v8, %s2440_s19 }
 0x672   :  { %v2713_v10 = vpop.permute.xlu1 %635 }
 0x673   :  { %v2711_v9 = vpop.permute.xlu0 %633 }
 0x674   :  { %2093 = vmatprep.mubr.msk.f32.mxu0 %vm329_vm2, %v2711_v9 }
 0x675   :  { %2094 = vmatmul.mubr.msk.f32.vlgmr.msra.gmra.mrb[4].mxu0 %vm329_vm2, %v2713_v10 }
 0x676   :  { %2247 = vmatpush3.bf16.msra.mxu0 %v2547_v17 }
 0x677   :  { %2249 = vmatprep.subr.bf16.mxu0 %v2562_v22 }
 0x67a   :  { %2251 = vmatpush3.bf16.msra.mxu0 %v2562_v22 }
 0x67b   :  { %2261 = vmatprep.subr.bf16.mxu0 %v2547_v17 }
 0x748   :  { %v2095_v13 = vpop.f32.mrb[4].mxu0 }
 0x749   :  { %v723_v14 = vadd.f32 %v2095_v13, %v2725_v11  ;;  %v713_v15 = vpop.f32.mrb[5].mxu0 }
 0x74a   :  { %v722_v18 = vadd.f32 %v713_v15, %v282_v12 }
 0x74b   :  { %2344 = vtanh.f32 %v723_v14  ;;  %v1887_v36 = vmul.f32 -1.442695, %v723_v14 }
 0x74c   :  { %2346 = vtanh.f32 %v722_v18  ;;  %v1886_v37 = vmul.f32 -1.442695, %v722_v18 }
 0x74d   :  { %2348 = vpow2.f32 %v1887_v36 }
 0x74e   :  { %2350 = vpow2.f32 %v1886_v37 }
 0x755   :  { %v2345_v33 = vpop.eup %2344 }
 0x756   :  { %v2347_v35 = vpop.eup %2346  ;;  %751 = vrot.lane.b32.xlu1 %v2345_v33, %s2441_s21 }
 0x757   :  { %749 = vrot.lane.b32.xlu0 %v2347_v35, %s2441_s21  ;;  %v2349_v20 = vpop.eup %2348 }
 0x758   :  { %v2351_v38 = vpop.eup %2350  ;;  %v731_v16 = vadd.f32 1.0, %v2349_v20 }
 0x759   :  { %v730_v39 = vadd.f32 1.0, %v2351_v38 }
 0x75a   :  { %2352 = vrcp.f32 %v731_v16 }
 0x75b   :  { %2354 = vrcp.f32 %v730_v39 }
 0x764   :  { %v2353_v40 = vpop.eup %2352 }
 0x765   :  { %v2355_v42 = vpop.eup %2354  ;;  %v746_v46 = vmul.f32 %v2353_v40, %v741_v0 }
 0x766   :  { %v745_v48 = vmul.f32 %v2355_v42, %v742_v1 }
 0x7c8   :  { %v752_v41 = vpop.permute.xlu1 %751 }
 0x7c9   :  { %v756_v43 = vmul.f32 %v2353_v40, %v752_v41  ;;  %v750_v44 = vpop.permute.xlu0 %749 }
 0x7ca   :  { %v755_v45 = vmul.f32 %v2355_v42, %v750_v44 }
 0x7cb   :  { %761 = vrot.lane.b32.xlu1 %v756_v43, %s2440_s19 }
 0x7cc   :  { %759 = vrot.lane.b32.xlu0 %v755_v45, %s2440_s19 }
 0x83d   :  { %v762_v47 = vpop.permute.xlu1 %761 }
 0x83e   :  { %v766_v49 = vadd.f32 %v762_v47, %v746_v46  ;;  %v760_v34 = vpop.permute.xlu0 %759 }
 0x83f   :  { %v765_v50 = vadd.f32 %v760_v34, %v745_v48 }
 0x840   :  { %2356 = vtanh.f32 %v766_v49  ;;  %v899_v51 = vrot.slane %v766_v49, 4 }
 0x841   :  { %2358 = vtanh.f32 %v765_v50  ;;  %v898_v52 = vrot.slane %v765_v50, 4 }
 0x843   :  { %v900_v53 = vsel %vm562_vm3, %v898_v52, %v899_v51 }
 0x84a   :  { %v2357_v54 = vpop.eup %2356 }
 0x84b   :  { %v2359_v55 = vpop.eup %2358  ;;  %773 = vrot.lane.b32.xlu1 %v2357_v54, %s2441_s21 }
 0x84c   :  { %771 = vrot.lane.b32.xlu0 %v2359_v55, %s2441_s21  ;;  %v2778_v55 = vadd.f32 %v2671_v21, %v2601_v32 }
 0x8bd   :  { %v774_v56 = vpop.permute.xlu1 %773 }
 0x8be   :  { %v778_v58 = vmul.f32 %v2353_v40, %v774_v56  ;;  %v772_v59 = vpop.permute.xlu0 %771  ;;  %v297_v56 = vadd.f32 %v2601_v32, %v2673_v23 }
 0x8bf   :  { %v777_v60 = vmul.f32 %v2355_v42, %v772_v59 }
 0x8c0   :  { %786 = vrot.lane.b32.xlu1 %v778_v58, %s2440_s19 }
 0x8c1   :  { %784 = vrot.lane.b32.xlu0 %v777_v60, %s2440_s19 }
 0x932   :  { %v2741_v63 = vpop.permute.xlu1 %786 }
 0x933   :  { %v2739_v62 = vpop.permute.xlu0 %784 }
 0x934   :  { %2104 = vmatprep.mubr.msk.f32.mxu1 %vm329_vm2, %v2739_v62 }
 0x935   :  { %2105 = vmatmul.mubr.msk.f32.vlgmr.msra.gmra.mrb[14].mxu1 %vm329_vm2, %v2741_v63 }
 0x936   :  { %2255 = vmatpush3.bf16.msra.mxu1 %v2547_v17 }
 0x937   :  { %2257 = vmatprep.subr.bf16.mxu1 %v2562_v22 }
 0x93a   :  { %2259 = vmatpush3.bf16.msra.mxu1 %v2562_v22 }
 0x93b   :  { %2269 = vmatprep.subr.bf16.mxu1 %v2547_v17 }
 0xa08   :  { %v2106_v0 = vpop.f32.mrb[14].mxu1 }
 0xa09   :  { %v876_v1 = vrot.slane %v2106_v0, 4  ;;  %v864_v3 = vpop.f32.mrb[15].mxu1 }
 0xa0a   :  { %v875_v4 = vrot.slane %v864_v3, 4 }
 0xa0c   :  { %v877_v61 = vsel %vm562_vm3, %v875_v4, %v876_v1  ;;  %v880_v5 = vadd.f32 %v875_v4, %v2725_v11 }
 0xa0d   :  { %v881_v6 = vadd.f32 %v877_v61, %v292_v57 }
 0xa0e   :  { %2360 = vtanh.f32 %v880_v5  ;;  %v1892_v8 = vmul.f32 -1.442695, %v880_v5 }
 0xa0f   :  { %2362 = vtanh.f32 %v881_v6  ;;  %v1893_v12 = vmul.f32 -1.442695, %v881_v6 }
 0xa10   :  { %2364 = vpow2.f32 %v1892_v8 }
 0xa11   :  { %2366 = vpow2.f32 %v1893_v12 }
 0xa18   :  { %v2361_v2 = vpop.eup %2360 }
 0xa19   :  { %v2363_v7 = vpop.eup %2362  ;;  %907 = vrot.lane.b32.xlu0 %v2361_v2, %s2441_s21 }
 0xa1a   :  { %909 = vrot.lane.b32.xlu1 %v2363_v7, %s2441_s21  ;;  %v2365_v13 = vpop.eup %2364 }
 0xa1b   :  { %v2367_v14 = vpop.eup %2366  ;;  %v888_v19 = vadd.f32 1.0, %v2365_v13 }
 0xa1c   :  { %v889_v15 = vadd.f32 1.0, %v2367_v14 }
 0xa1d   :  { %2368 = vrcp.f32 %v888_v19 }
 0xa1e   :  { %2370 = vrcp.f32 %v889_v15 }
 0xa27   :  { %v2369_v11 = vpop.eup %2368 }
 0xa28   :  { %v2371_v33 = vpop.eup %2370  ;;  %v903_v20 = vmul.f32 %v2369_v11, %v898_v52 }
 0xa29   :  { %v904_v16 = vmul.f32 %v2371_v33, %v900_v53 }
 0xa8b   :  { %v908_v18 = vpop.permute.xlu0 %907 }
 0xa8c   :  { %v913_v35 = vmul.f32 %v2369_v11, %v908_v18  ;;  %v910_v36 = vpop.permute.xlu1 %909 }
 0xa8d   :  { %v914_v37 = vmul.f32 %v2371_v33, %v910_v36 }
 0xa8e   :  { %917 = vrot.lane.b32.xlu0 %v913_v35, %s2440_s19 }
 0xa8f   :  { %919 = vrot.lane.b32.xlu1 %v914_v37, %s2440_s19 }
 0xb00   :  { %v918_v38 = vpop.permute.xlu0 %917 }
 0xb01   :  { %v923_v39 = vadd.f32 %v918_v38, %v903_v20  ;;  %v920_v40 = vpop.permute.xlu1 %919 }
 0xb02   :  { %v924_v41 = vadd.f32 %v920_v40, %v904_v16 }
 0xb03   :  { %2372 = vtanh.f32 %v923_v39  ;;  %v1052_v42 = vrot.slane %v923_v39, 4 }
 0xb04   :  { %2374 = vtanh.f32 %v924_v41  ;;  %v1053_v43 = vrot.slane %v924_v41, 4 }
 0xb06   :  { %v1054_v44 = vsel %vm562_vm3, %v1052_v42, %v1053_v43 }
 0xb0d   :  { %v2373_v45 = vpop.eup %2372 }
 0xb0e   :  { %v2375_v46 = vpop.eup %2374  ;;  %929 = vrot.lane.b32.xlu0 %v2373_v45, %s2441_s21 }
 0xb0f   :  { %931 = vrot.lane.b32.xlu1 %v2375_v46, %s2441_s21 }
 0xb80   :  { %v930_v47 = vpop.permute.xlu0 %929 }
 0xb81   :  { %v935_v48 = vmul.f32 %v2369_v11, %v930_v47  ;;  %v932_v49 = vpop.permute.xlu1 %931 }
 0xb82   :  { %v936_v34 = vmul.f32 %v2371_v33, %v932_v49 }
 0xb83   :  { %v942_v50 = vrot.slane %v935_v48, 4  ;;  %v307_v48 = vadd.f32 %v2601_v32, %v2677_v25 }
 0xb84   :  { %v943_v51 = vrot.slane %v936_v34, 4 }
 0xb86   :  { %947 = vrot.lane.b32.xlu1 %v943_v51, %s2440_s19  ;;  %v944_v52 = vsel %vm562_vm3, %v942_v50, %v943_v51 }
 0xb87   :  { %945 = vrot.lane.b32.xlu0 %v944_v52, %s2440_s19 }
 0xbf8   :  { %v2767_v54 = vpop.permute.xlu1 %947 }
 0xbf9   :  { %v2765_v53 = vpop.permute.xlu0 %945 }
 0xbfa   :  { %2115 = vmatprep.mubr.msk.f32.mxu0 %vm329_vm2, %v2765_v53 }
 0xbfb   :  { %2116 = vmatmul.mubr.msk.f32.vlgmr.msra.gmra.mrb[6].mxu0 %vm329_vm2, %v2767_v54 }
 0xbfc   :  { %2263 = vmatpush3.bf16.msra.mxu0 %v2547_v17 }
 0xbfd   :  { %2265 = vmatprep.subr.bf16.mxu0 %v2562_v22 }
 0xc00   :  { %2267 = vmatpush3.bf16.msra.mxu0 %v2562_v22 }
 0xcce   :  { %v2117_v58 = vpop.f32.mrb[6].mxu0 }
 0xccf   :  { %v1035_v59 = vadd.f32 %v2117_v58, %v2778_v55  ;;  %v1025_v60 = vpop.f32.mrb[7].mxu0 }
 0xcd0   :  { %v1034_v0 = vadd.f32 %v1025_v60, %v297_v56 }
 0xcd1   :  { %2376 = vtanh.f32 %v1035_v59  ;;  %v1899_v4 = vmul.f32 -1.442695, %v1035_v59 }
 0xcd2   :  { %2378 = vtanh.f32 %v1034_v0  ;;  %v1898_v57 = vmul.f32 -1.442695, %v1034_v0 }
 0xcd3   :  { %2380 = vpow2.f32 %v1899_v4 }
 0xcd4   :  { %2382 = vpow2.f32 %v1898_v57 }
 0xcdb   :  { %v2377_v1 = vpop.eup %2376 }
 0xcdc   :  { %v2379_v3 = vpop.eup %2378  ;;  %1063 = vrot.lane.b32.xlu1 %v2377_v1, %s2441_s21 }
 0xcdd   :  { %1061 = vrot.lane.b32.xlu0 %v2379_v3, %s2441_s21  ;;  %v2381_v21 = vpop.eup %2380 }
 0xcde   :  { %v2383_v61 = vpop.eup %2382  ;;  %v1043_v23 = vadd.f32 1.0, %v2381_v21 }
 0xcdf   :  { %v1042_v5 = vadd.f32 1.0, %v2383_v61 }
 0xce0   :  { %2384 = vrcp.f32 %v1043_v23 }
 0xce1   :  { %2386 = vrcp.f32 %v1042_v5 }
 0xcea   :  { %v2385_v6 = vpop.eup %2384 }
 0xceb   :  { %v2387_v7 = vpop.eup %2386  ;;  %v1058_v14 = vmul.f32 %v2385_v6, %v1053_v43 }
 0xcec   :  { %v1057_v15 = vmul.f32 %v2387_v7, %v1054_v44 }
 0xd4e   :  { %v1064_v2 = vpop.permute.xlu1 %1063 }
 0xd4f   :  { %v1068_v8 = vmul.f32 %v2385_v6, %v1064_v2  ;;  %v1062_v12 = vpop.permute.xlu0 %1061 }
 0xd50   :  { %v1067_v13 = vmul.f32 %v2387_v7, %v1062_v12 }
 0xd51   :  { %1073 = vrot.lane.b32.xlu1 %v1068_v8, %s2440_s19 }
 0xd52   :  { %1071 = vrot.lane.b32.xlu0 %v1067_v13, %s2440_s19 }
 0xdc3   :  { %v1074_v19 = vpop.permute.xlu1 %1073 }
 0xdc4   :  { %v1078_v11 = vadd.f32 %v1074_v19, %v1058_v14  ;;  %v1072_v18 = vpop.permute.xlu0 %1071  ;;  %v1583_v14 = vld [vmem:[%s3002_s8 + $0x20] sm:$0xff]  ;;  %v1584_v19 = vld [vmem:[%s3002_s8 + $0x28] sm:$0xff] }
 0xdc5   :  { %v1077_v33 = vadd.f32 %v1072_v18, %v1057_v15  ;;  %v2276_v15 = vpack.c.bf16 %v1584_v19, %v1583_v14 }
 0xdc6   :  { %2388 = vtanh.f32 %v1078_v11  ;;  %v1211_v35 = vrot.slane %v1078_v11, 4 }
 0xdc7   :  { %2390 = vtanh.f32 %v1077_v33  ;;  %v1210_v36 = vrot.slane %v1077_v33, 4  ;;  %2277 = vmatprep.subr.bf16.mxu0 %v2276_v15 }
 0xdc9   :  { %v1212_v37 = vsel %vm562_vm3, %v1210_v36, %v1211_v35 }
 0xdd0   :  { %v2389_v20 = vpop.eup %2388 }
 0xdd1   :  { %v2391_v38 = vpop.eup %2390  ;;  %1085 = vrot.lane.b32.xlu1 %v2389_v20, %s2441_s21 }
 0xdd2   :  { %1083 = vrot.lane.b32.xlu0 %v2391_v38, %s2441_s21  ;;  %v1585_v38 = vld [vmem:[%s3002_s8 + $0x30] sm:$0xff] }
 0xe43   :  { %v1086_v16 = vpop.permute.xlu1 %1085 }
 0xe44   :  { %v1090_v39 = vmul.f32 %v2385_v6, %v1086_v16  ;;  %v1084_v40 = vpop.permute.xlu0 %1083  ;;  %v1586_v16 = vld [vmem:[%s3002_s8 + $0x38] sm:$0xff] }
 0xe45   :  { %v1089_v41 = vmul.f32 %v2387_v7, %v1084_v40  ;;  %v2280_v40 = vpack.c.bf16 %v1586_v16, %v1585_v38 }
 0xe46   :  { %1098 = vrot.lane.b32.xlu1 %v1090_v39, %s2440_s19 }
 0xe47   :  { %1096 = vrot.lane.b32.xlu0 %v1089_v41, %s2440_s19 }
 0xeb8   :  { %v2794_v43 = vpop.permute.xlu1 %1098 }
 0xeb9   :  { %v2792_v42 = vpop.permute.xlu0 %1096 }
 0xeba   :  { %2126 = vmatprep.mubr.msk.f32.mxu1 %vm329_vm2, %v2792_v42 }
 0xebb   :  { %2127 = vmatmul.mubr.msk.f32.vlgmr.msra.gmra.mrb[16].mxu1 %vm329_vm2, %v2794_v43 }
 0xebc   :  { %2271 = vmatpush3.bf16.msra.mxu1 %v2547_v17 }
 0xebd   :  { %2273 = vmatprep.subr.bf16.mxu1 %v2562_v22 }
 0xec0   :  { %2275 = vmatpush3.bf16.msra.mxu1 %v2562_v22 }
 0xf8e   :  { %v2128_v44 = vpop.f32.mrb[16].mxu1 }
 0xf8f   :  { %v1188_v45 = vrot.slane %v2128_v44, 4  ;;  %v1176_v46 = vpop.f32.mrb[17].mxu1  ;;  %v317_v44 = vadd.f32 %v2601_v32, %v2681_v27 }
 0xf90   :  { %v1187_v47 = vrot.slane %v1176_v46, 4 }
 0xf92   :  { %v1189_v49 = vsel %vm562_vm3, %v1187_v47, %v1188_v45  ;;  %v1192_v34 = vadd.f32 %v1187_v47, %v2778_v55  ;;  %v312_v45 = vadd.f32 %v2675_v24, %v2601_v32 }
 0xf93   :  { %v1193_v50 = vadd.f32 %v1189_v49, %v307_v48 }
 0xf94   :  { %2392 = vtanh.f32 %v1192_v34  ;;  %v1904_v22 = vmul.f32 -1.442695, %v1192_v34 }
 0xf95   :  { %2394 = vtanh.f32 %v1193_v50  ;;  %v1905_v52 = vmul.f32 -1.442695, %v1193_v50 }
 0xf96   :  { %2396 = vpow2.f32 %v1904_v22 }
 0xf97   :  { %2398 = vpow2.f32 %v1905_v52 }
 0xf9e   :  { %v2393_v51 = vpop.eup %2392 }
 0xf9f   :  { %v2395_v17 = vpop.eup %2394  ;;  %1219 = vrot.lane.b32.xlu0 %v2393_v51, %s2441_s21 }
 0xfa0   :  { %1221 = vrot.lane.b32.xlu1 %v2395_v17, %s2441_s21  ;;  %v2397_v56 = vpop.eup %2396 }
 0xfa1   :  { %v2399_v58 = vpop.eup %2398  ;;  %v1200_v25 = vadd.f32 1.0, %v2397_v56 }
 0xfa2   :  { %v1201_v59 = vadd.f32 1.0, %v2399_v58 }
 0xfa3   :  { %2400 = vrcp.f32 %v1200_v25 }
 0xfa4   :  { %2402 = vrcp.f32 %v1201_v59 }
 0xfad   :  { %v2401_v55 = vpop.eup %2400 }
 0xfae   :  { %v2403_v0 = vpop.eup %2402  ;;  %v1215_v57 = vmul.f32 %v2401_v55, %v1210_v36 }
 0xfaf   :  { %v1216_v61 = vmul.f32 %v2403_v0, %v1212_v37 }
0x1011   :  { %v1220_v60 = vpop.permute.xlu0 %1219 }
0x1012   :  { %v1225_v1 = vmul.f32 %v2401_v55, %v1220_v60  ;;  %v1222_v3 = vpop.permute.xlu1 %1221 }
0x1013   :  { %v1226_v4 = vmul.f32 %v2403_v0, %v1222_v3 }
0x1014   :  { %1229 = vrot.lane.b32.xlu0 %v1225_v1, %s2440_s19 }
0x1015   :  { %1231 = vrot.lane.b32.xlu1 %v1226_v4, %s2440_s19 }
0x1086   :  { %v1230_v21 = vpop.permute.xlu0 %1229 }
0x1087   :  { %v1235_v23 = vadd.f32 %v1230_v21, %v1215_v57  ;;  %v1232_v5 = vpop.permute.xlu1 %1231 }
0x1088   :  { %v2811_v6 = vadd.f32 %v1232_v5, %v1216_v61 }
0x1089   :  { %2404 = vtanh.f32 %v1235_v23  ;;  %v1364_v2 = vrot.slane %v1235_v23, 4 }
0x108a   :  { %2406 = vtanh.f32 %v2811_v6  ;;  %v1365_v7 = vrot.slane %v2811_v6, 4 }
0x108c   :  { %v2816_v8 = vsel %vm562_vm3, %v1364_v2, %v1365_v7 }
0x1093   :  { %v2405_v12 = vpop.eup %2404 }
0x1094   :  { %v2407_v13 = vpop.eup %2406  ;;  %1241 = vrot.lane.b32.xlu0 %v2405_v12, %s2441_s21 }
0x1095   :  { %1243 = vrot.lane.b32.xlu1 %v2407_v13, %s2441_s21 }
0x1106   :  { %v1242_v11 = vpop.permute.xlu0 %1241 }
0x1107   :  { %v1247_v18 = vmul.f32 %v2401_v55, %v1242_v11  ;;  %v1244_v33 = vpop.permute.xlu1 %1243 }
0x1108   :  { %v1248_v35 = vmul.f32 %v2403_v0, %v1244_v33 }
0x1109   :  { %v1254_v36 = vrot.slane %v1247_v18, 4  ;;  %v322_v18 = vadd.f32 %v2679_v26, %v2601_v32 }
0x110a   :  { %v1255_v37 = vrot.slane %v1248_v35, 4 }
0x110c   :  { %1259 = vrot.lane.b32.xlu1 %v1255_v37, %s2440_s19  ;;  %v1256_v20 = vsel %vm562_vm3, %v1254_v36, %v1255_v37 }
0x110d   :  { %1257 = vrot.lane.b32.xlu0 %v1256_v20, %s2440_s19 }
0x117e   :  { %v2837_v41 = vpop.permute.xlu1 %1259 }
0x117f   :  { %v2835_v39 = vpop.permute.xlu0 %1257 }
0x1180   :  { %2137 = vmatprep.mubr.msk.f32.mxu0 %vm329_vm2, %v2835_v39 }
0x1181   :  { %2138 = vmatmul.mubr.msk.f32.vlgmr.msra.gmra.mrb[8].mxu0 %vm329_vm2, %v2837_v41 }
0x1182   :  { %2279 = vmatpush3.bf16.msra.mxu0 %v2276_v15  ;;  %2159 = vmatprep.mubr.msk.f32.mxu0 %vm329_vm2, %v2582_v28 }
0x1183   :  { %2281 = vmatprep.subr.bf16.mxu0 %v2280_v40 }
0x1186   :  { %2283 = vmatpush3.bf16.msra.mxu0 %v2280_v40 }
0x1189   :  { %2160 = vmatmul.mubr.msk.f32.vlgmr.msra.gmra.mrb[10].mxu0 %vm329_vm2, %v2584_v29 }
0x1254   :  { %v2139_v46 = vpop.f32.mrb[8].mxu0 }
0x1255   :  { %v1347_v47 = vadd.f32 %v2139_v46, %v317_v44  ;;  %v1337_v48 = vpop.f32.mrb[9].mxu0 }
0x1256   :  { %v1346_v49 = vadd.f32 %v1337_v48, %v312_v45 }
0x1257   :  { %2408 = vtanh.f32 %v1347_v47  ;;  %v1911_v28 = vmul.f32 -1.442695, %v1347_v47 }
0x1258   :  { %2410 = vtanh.f32 %v1346_v49  ;;  %v1910_v29 = vmul.f32 -1.442695, %v1346_v49 }
0x1259   :  { %2412 = vpow2.f32 %v1911_v28 }
0x125a   :  { %2414 = vpow2.f32 %v1910_v29 }
0x1261   :  { %v2409_v34 = vpop.eup %2408 }
0x1262   :  { %v2411_v50 = vpop.eup %2410  ;;  %1375 = vrot.lane.b32.xlu1 %v2409_v34, %s2441_s21 }
0x1263   :  { %1373 = vrot.lane.b32.xlu0 %v2411_v50, %s2441_s21  ;;  %v2413_v27 = vpop.eup %2412 }
0x1264   :  { %v2415_v51 = vpop.eup %2414  ;;  %v1355_v17 = vadd.f32 1.0, %v2413_v27 }
0x1265   :  { %v1354_v24 = vadd.f32 1.0, %v2415_v51 }
0x1266   :  { %2416 = vrcp.f32 %v1355_v17 }
0x1267   :  { %2418 = vrcp.f32 %v1354_v24  ;;  %v1579_v24 = vld [vmem:[%s3002_s8] sm:$0xff] }
0x1270   :  { %v2417_v22 = vpop.eup %2416 }
0x1271   :  { %v2419_v56 = vpop.eup %2418  ;;  %v1370_v55 = vmul.f32 %v2417_v22, %v1365_v7 }
0x1272   :  { %v1369_v0 = vmul.f32 %v2419_v56, %v2816_v8 }
0x12d4   :  { %v1376_v52 = vpop.permute.xlu1 %1375 }
0x12d5   :  { %v1380_v58 = vmul.f32 %v2417_v22, %v1376_v52  ;;  %v1374_v25 = vpop.permute.xlu0 %1373 }
0x12d6   :  { %v1379_v59 = vmul.f32 %v2419_v56, %v1374_v25  ;;  %v1581_v25 = vld [vmem:[%s3002_s8 + $0x10] sm:$0xff] }
0x12d7   :  { %1385 = vrot.lane.b32.xlu1 %v1380_v58, %s2440_s19 }
0x12d8   :  { %1383 = vrot.lane.b32.xlu0 %v1379_v59, %s2440_s19  ;;  %v1582_v59 = vld [vmem:[%s3002_s8 + $0x18] sm:$0xff] }
0x1349   :  { %v1386_v60 = vpop.permute.xlu1 %1385 }
0x134a   :  { %v1390_v1 = vadd.f32 %v1386_v60, %v1370_v55  ;;  %v1384_v3 = vpop.permute.xlu0 %1383  ;;  %v2288_v55 = vpack.c.bf16 %v1582_v59, %v1581_v25 }
0x134b   :  { %v1389_v4 = vadd.f32 %v1384_v3, %v1369_v0  ;;  %v1754_v0 = vld [vmem:[%s3003_s10] sm:$0xff]  ;;  %v1756_v3 = vld [vmem:[%s3003_s10 + $0x10] sm:$0xff] }
0x134c   :  { %2420 = vtanh.f32 %v1390_v1  ;;  %v1523_v57 = vrot.slane %v1390_v1, 4  ;;  %v1755_v1 = vld [vmem:[%s3003_s10 + $0x8] sm:$0xff] }
0x134d   :  { %2422 = vtanh.f32 %v1389_v4  ;;  %v1522_v21 = vrot.slane %v1389_v4, 4 }
0x134f   :  { %v1524_v61 = vsel %vm562_vm3, %v1522_v21, %v1523_v57 }
0x1356   :  { %v2421_v23 = vpop.eup %2420 }
0x1357   :  { %v2423_v5 = vpop.eup %2422  ;;  %1397 = vrot.lane.b32.xlu1 %v2421_v23, %s2441_s21 }
0x1358   :  { %1395 = vrot.lane.b32.xlu0 %v2423_v5, %s2441_s21 }
0x13c9   :  { %v1398_v6 = vpop.permute.xlu1 %1397 }
0x13ca   :  { %v1402_v2 = vmul.f32 %v2417_v22, %v1398_v6  ;;  %v1396_v7 = vpop.permute.xlu0 %1395  ;;  %v1580_v22 = vld [vmem:[%s3002_s8 + $0x8] sm:$0xff]  ;;  %v1758_v6 = vld [vmem:[%s3003_s10 + $0x20] sm:$0xff] }
0x13cb   :  { %v1401_v12 = vmul.f32 %v2419_v56, %v1396_v7  ;;  %v2284_v52 = vpack.c.bf16 %v1580_v22, %v1579_v24 }
0x13cc   :  { %1410 = vrot.lane.b32.xlu1 %v1402_v2, %s2440_s19  ;;  %v1759_v2 = vld [vmem:[%s3003_s10 + $0x28] sm:$0xff] }
0x13cd   :  { %1408 = vrot.lane.b32.xlu0 %v1401_v12, %s2440_s19  ;;  %2285 = vmatprep.subr.bf16.mxu0 %v2284_v52 }
0x13ce   :  { %2287 = vmatpush3.bf16.msra.mxu0 %v2284_v52 }
0x13cf   :  { %2289 = vmatprep.subr.bf16.mxu0 %v2288_v55 }
0x13d2   :  { %2291 = vmatpush3.bf16.msra.mxu0 %v2288_v55 }
0x143e   :  { %v2863_v13 = vpop.permute.xlu1 %1410 }
0x143f   :  { %v2861_v8 = vpop.permute.xlu0 %1408 }
0x1440   :  { %2148 = vmatprep.mubr.msk.f32.mxu1 %vm329_vm2, %v2861_v8 }
0x1441   :  { %2149 = vmatmul.mubr.msk.f32.vlgmr.msra.gmra.mrb[18].mxu1 %vm329_vm2, %v2863_v13 }
0x1514   :  { %v2150_v14 = vpop.f32.mrb[18].mxu1 }
0x1515   :  { %v1500_v19 = vrot.slane %v2150_v14, 4  ;;  %v1488_v15 = vpop.f32.mrb[19].mxu1  ;;  %v2300_v14 = vpack.c.bf16 %v1759_v2, %v1758_v6 }
0x1516   :  { %v1499_v11 = vrot.slane %v1488_v15, 4  ;;  %v1882_v15 = vld [vmem:[%s3004_s1 + $0x10] sm:$0xff] }
0x1518   :  { %v1501_v33 = vsel %vm562_vm3, %v1499_v11, %v1500_v19  ;;  %v1504_v35 = vadd.f32 %v1499_v11, %v317_v44  ;;  %v1883_v11 = vld [vmem:[%s3004_s1 + $0x18] sm:$0xf] }
0x1519   :  { %v1505_v36 = vadd.f32 %v1501_v33, %v322_v18  ;;  %v467_v18 = vld [vmem:[%s3004_s1] sm:$0xff] }
0x151a   :  { %2424 = vtanh.f32 %v1504_v35  ;;  %v1916_v38 = vmul.f32 -1.442695, %v1504_v35  ;;  %v1888_v33 = vld [vmem:[%s3004_s1 + $0x20] sm:$0xff]  ;;  %v468_v35 = vld [vmem:[%s3004_s1 + $0x8] sm:$0xf] }
0x151b   :  { %2426 = vtanh.f32 %v1505_v36  ;;  %v1917_v16 = vmul.f32 -1.442695, %v1505_v36  ;;  %v639_v36 = vmul.f32 %v1882_v15, %v2711_v9  ;;  %v478_v9 = vmul.f32 %v2687_v31, %v468_v35  ;;  %v1906_v31 = vld [vmem:[%s3004_s1 + $0x50] sm:$0xff] }
0x151c   :  { %2428 = vpow2.f32 %v1916_v38  ;;  %v1894_v38 = vld [vmem:[%s3004_s1 + $0x30] sm:$0xff] }
0x151d   :  { %2430 = vpow2.f32 %v1917_v16  ;;  %v477_v16 = vmul.f32 %v2683_v30, %v467_v18  ;;  %v1901_v30 = vld [vmem:[%s3004_s1 + $0x48] sm:$0xf] }
0x1524   :  { %v2425_v37 = vpop.eup %2424 }
0x1525   :  { %v2427_v20 = vpop.eup %2426  ;;  %1531 = vrot.lane.b32.xlu0 %v2425_v37, %s2441_s21  ;;  %v1889_v37 = vld [vmem:[%s3004_s1 + $0x28] sm:$0xf] }
0x1526   :  { %1533 = vrot.lane.b32.xlu1 %v2427_v20, %s2441_s21  ;;  %v2429_v40 = vpop.eup %2428  ;;  %v640_v20 = vmul.f32 %v1883_v11, %v2713_v10  ;;  %v1900_v10 = vld [vmem:[%s3004_s1 + $0x40] sm:$0xff] }
0x1527   :  { %v2431_v45 = vpop.eup %2430  ;;  %v1512_v46 = vadd.f32 1.0, %v2429_v40  ;;  %v790_v40 = vmul.f32 %v1888_v33, %v2739_v62 }
0x1528   :  { %v1513_v32 = vadd.f32 1.0, %v2431_v45  ;;  %v1895_v45 = vld [vmem:[%s3004_s1 + $0x38] sm:$0xf]  ;;  %v642_v62 = vadd.f32 %v640_v20, %v478_v9 }
0x1529   :  { %2432 = vrcp.f32 %v1512_v46  ;;  %v791_v46 = vmul.f32 %v1889_v37, %v2741_v63  ;;  %v1102_v63 = vmul.f32 %v1900_v10, %v2792_v42 }
0x152a   :  { %2434 = vrcp.f32 %v1513_v32  ;;  %v641_v32 = vadd.f32 %v639_v36, %v477_v16 }
0x1533   :  { %v2433_v26 = vpop.eup %2432 }
0x1534   :  { %v2435_v47 = vpop.eup %2434  ;;  %v1527_v50 = vmul.f32 %v2433_v26, %v1522_v21  ;;  %v2292_v21 = vpack.c.bf16 %v1755_v1, %v1754_v0  ;;  %v1761_v0 = vld [vmem:[%s3003_s10 + $0x38] sm:$0xff] }
0x1535   :  { %v1528_v29 = vmul.f32 %v2435_v47, %v1524_v61  ;;  %v1757_v61 = vld [vmem:[%s3003_s10 + $0x18] sm:$0xff] }
0x1536   :  { %v2296_v5 = vpack.c.bf16 %v1757_v61, %v1756_v3  ;;  %2293 = vmatprep.subr.bf16.mxu1 %v2292_v21  ;;  %v17_v3 = vstv %s3005_s11 }
0x1537   :  { %2295 = vmatpush3.bf16.msra.mxu1 %v2292_v21  ;;  %18 = vst [vmem:[#allocation2] sm:$0x1] %v17_v3 }
0x1538   :  { %2297 = vmatprep.subr.bf16.mxu1 %v2296_v5 }
0x153b   :  { %2299 = vmatpush3.bf16.msra.mxu1 %v2296_v5 }
0x153c   :  { %2301 = vmatprep.subr.bf16.mxu1 %v2300_v14 }
0x153e   :  { %v1925_v2 = vld [vmem:[#allocation2] ss:$0 sm:$0xff] }
0x153f   :  { %2303 = vmatpush3.bf16.msra.mxu1 %v2300_v14 }
0x1597   :  { %v1532_v44 = vpop.permute.xlu0 %1531 }
0x1598   :  { %v1537_v48 = vmul.f32 %v2433_v26, %v1532_v44  ;;  %v1534_v49 = vpop.permute.xlu1 %1533  ;;  %v952_v44 = vmul.f32 %v1895_v45, %v2767_v54  ;;  %v1263_v54 = vmul.f32 %v1906_v31, %v2835_v39  ;;  %v1918_v39 = vld [vmem:[%s3004_s1 + $0x70] sm:$0xff] }
0x1599   :  { %v1538_v34 = vmul.f32 %v2435_v47, %v1534_v49  ;;  %v793_v49 = vadd.f32 %v791_v46, %v642_v62 }
0x159a   :  { %1541 = vrot.lane.b32.xlu0 %v1537_v48, %s2440_s19  ;;  %v1907_v48 = vld [vmem:[%s3004_s1 + $0x58] sm:$0xf] }
0x159b   :  { %1543 = vrot.lane.b32.xlu1 %v1538_v34, %s2440_s19  ;;  %v1912_v34 = vld [vmem:[%s3004_s1 + $0x60] sm:$0xff]  ;;  %v1264_v42 = vmul.f32 %v1907_v48, %v2837_v41 }
0x160c   :  { %v1542_v28 = vpop.permute.xlu0 %1541 }
0x160d   :  { %v1547_v27 = vadd.f32 %v1542_v28, %v1527_v50  ;;  %v1544_v51 = vpop.permute.xlu1 %1543  ;;  %v1913_v28 = vld [vmem:[%s3004_s1 + $0x68] sm:$0xf] }
0x160e   :  { %v1548_v17 = vadd.f32 %v1544_v51, %v1528_v29  ;;  %v954_v29 = vadd.f32 %v952_v44, %v793_v49  ;;  %v1414_v51 = vmul.f32 %v1912_v34, %v2861_v8  ;;  %v1415_v24 = vmul.f32 %v1913_v28, %v2863_v13  ;;  %v1760_v13 = vld [vmem:[%s3003_s10 + $0x30] sm:$0xff] }
0x160f   :  { %2436 = vtanh.f32 %v1547_v27  ;;  %v2304_v1 = vpack.c.bf16 %v1761_v0, %v1760_v13 }
0x1610   :  { %2438 = vtanh.f32 %v1548_v17 }
0x1611   :  { %2305 = vmatprep.subr.bf16.mxu1 %v2304_v1 }
0x1612   :  { %2307 = vmatpush3.bf16.msra.mxu1 %v2304_v1 }
0x1619   :  { %v2437_v56 = vpop.eup %2436 }
0x161a   :  { %v2439_v58 = vpop.eup %2438  ;;  %1553 = vrot.lane.b32.xlu0 %v2437_v56, %s2441_s21 }
0x161b   :  { %1555 = vrot.lane.b32.xlu1 %v2439_v58, %s2441_s21 }
0x168c   :  { %v1554_v60 = vpop.permute.xlu0 %1553 }
0x168d   :  { %v1559_v4 = vmul.f32 %v2433_v26, %v1554_v60  ;;  %v1556_v57 = vpop.permute.xlu1 %1555  ;;  %v951_v26 = vmul.f32 %v1894_v38, %v2765_v53  ;;  %v1103_v53 = vmul.f32 %v1901_v30, %v2794_v43  ;;  %v1919_v43 = vld [vmem:[%s3004_s1 + $0x78] sm:$0xf] }
0x168e   :  { %v1560_v23 = vmul.f32 %v2435_v47, %v1556_v57  ;;  %v792_v47 = vadd.f32 %v790_v40, %v641_v32 }
0x168f   :  { %v1566_v7 = vrot.slane %v1559_v4, 4  ;;  %v1105_v17 = vadd.f32 %v1103_v53, %v954_v29  ;;  %v1924_v4 = vld [vmem:[%s3006_s9] ss:$0 sm:$0xff] }
0x1690   :  { %v1567_v12 = vrot.slane %v1560_v23, 4  ;;  %v953_v50 = vadd.f32 %v951_v26, %v792_v47 }
0x1691   :  { %v1266_v56 = vadd.f32 %v1264_v42, %v1105_v17 }
0x1692   :  { %1571 = vrot.lane.b32.xlu1 %v1567_v12, %s2440_s19  ;;  %v1568_v19 = vsel %vm562_vm3, %v1566_v7, %v1567_v12  ;;  %v1104_v27 = vadd.f32 %v1102_v63, %v953_v50 }
0x1693   :  { %1569 = vrot.lane.b32.xlu0 %v1568_v19, %s2440_s19  ;;  %v1417_v55 = vadd.f32 %v1415_v24, %v1266_v56 }
0x1694   :  { %v1265_v22 = vadd.f32 %v1263_v54, %v1104_v27 }
0x1696   :  { %v1416_v41 = vadd.f32 %v1414_v51, %v1265_v22 }
0x1704   :  { %v1572_v52 = vpop.permute.xlu1 %1571 }
0x1705   :  { %v1576_v58 = vmul.f32 %v1919_v43, %v1572_v52  ;;  %v1570_v25 = vpop.permute.xlu0 %1569 }
0x1706   :  { %v1575_v59 = vmul.f32 %v1918_v39, %v1570_v25 }
0x1707   :  { %v1578_v60 = vadd.f32 %v1576_v58, %v1417_v55 }
0x1708   :  { %v1577_v8 = vadd.f32 %v1575_v59, %v1416_v41 }
0x170a   :  { %2170 = vmatprep.mubr.msk.f32.mxu0 %vm329_vm2, %v1577_v8 }
0x170b   :  { %2171 = vmatmul.mubr.msk.f32.vlgmr.msra.gmra.mrb[10].mxu0 %vm329_vm2, %v1578_v60 }
0x17de   :  { %v2172_v57 = vpop.f32.mrb[10].mxu0 }
0x17df   :  { %v1751_v21 = vadd.f32 %v2172_v57, %v1924_v4  ;;  %v1734_v61 = vpop.f32.mrb[11].mxu0 }
0x17e0   :  { %v1750_v23 = vadd.f32 %v1924_v4, %v1734_v61 }
0x17e1   :  { %v1753_v6 = vmax.f32 %v1751_v21, 0.0 }
0x17e2   :  { %v1752_v5 = vmax.f32 %v1750_v23, 0.0 }
0x17e4   :  { %2189 = vmatprep.mubr.msk.f32.mxu1 %vm60_vm0, %v1752_v5 }
0x17e5   :  { %2190 = vmatmul.mubr.msk.f32.vlgmr.msra.gmra.mrb[20].mxu1 %vm60_vm0, %v1753_v6 }
0x18b8   :  { %v2191_v7 = vpop.f32.mrb[20].mxu1 }
0x18b9   :  { %v1847_v12 = vadd.f32 %v2191_v7, %v1925_v2  ;;  %v1841_v14 = vpop.f32.mrb[21].mxu1 }
0x18ba   :  { %v1842_v19 = vadd.f32 %v1925_v2, %v1841_v14 }
0x18bb   :  { %1853 = vst.msk [vmem:[%s3007_s12 + $0x8] sm:$0xf] %vm1852_vm4, %v1847_v12 }
0x18bc   :  { %1851 = vst.msk [vmem:[%s3007_s12] sm:$0xff] %vm1850_vm5, %v1842_v19 }

</bundles_post_ra>
